<compile_context>
chip_gen: v7x
topology: tpu7x:2x2x1
jax: 0.10.0
libtpu: 0.0.40
codegen_flags: <defaults>
</compile_context>

<pallas_src>
import jax
import jax.numpy as jnp
from jax.experimental import pallas as pl
from jax.experimental.pallas import tpu as pltpu


def _round_up(x, m):
    return ((x + m - 1) // m) * m


def mlp_kernel(x_ref, w1_ref, b1_ref, w2_ref, b2_ref, w3_ref, b3_ref, out_ref):
    # x_ref : (TB, 784)        input tile (bf16 or f32)
    # w1_ref: (784, H_P)       W1.T, zero-padded on the H axis
    # w2_ref: (H_P, H_P)       W2.T, zero-padded
    # w3_ref: (H_P, C_P)       W3.T, zero-padded
    # b*_ref: (1, H_P/C_P)     biases, f32, zero-padded
    # out_ref:(TB, C_P)        lane-dense f32 output tile (unmasked vst)
    x = x_ref[...]
    b1 = b1_ref[...]          # hoisted single reads
    b2 = b2_ref[...]
    b3 = b3_ref[...]

    h = jnp.dot(x, w1_ref[...], preferred_element_type=jnp.float32) + b1
    h = jnp.maximum(h, 0.0)
    # TODO(synk): training-mode Dropout (stochastic masking) not implemented;
    #             eval-mode Dropout is the identity.
    h = h.astype(w2_ref.dtype)
    h = jnp.dot(h, w2_ref[...], preferred_element_type=jnp.float32) + b2
    h = jnp.maximum(h, 0.0)
    h = h.astype(w3_ref.dtype)
    out_ref[...] = jnp.dot(h, w3_ref[...],
                           preferred_element_type=jnp.float32) + b3


def pack_mlp_params(W1, b1, W2, b2, W3, b3, *, use_bf16=True):
    """One-time packing of PyTorch-layout (out, in) weights into kernel layout.

    Do this ONCE per model (not per forward call) so the transpose / zero-pad
    HBM traffic is amortized away from steady-state inference.
    """
    H = int(W1.shape[0])
    C = int(W3.shape[0])
    H_P = _round_up(H, 128)
    C_P = _round_up(C, 128)
    cdt = jnp.bfloat16 if use_bf16 else jnp.float32

    w1 = jnp.zeros((784, H_P), cdt).at[:, :H].set(W1.T.astype(cdt))
    w2 = jnp.zeros((H_P, H_P), cdt).at[:H, :H].set(W2.T.astype(cdt))
    w3 = jnp.zeros((H_P, C_P), cdt).at[:H, :C].set(W3.T.astype(cdt))
    b1p = jnp.zeros((1, H_P), jnp.float32).at[:, :H].set(
        b1.reshape(1, H).astype(jnp.float32))
    b2p = jnp.zeros((1, H_P), jnp.float32).at[:, :H].set(
        b2.reshape(1, H).astype(jnp.float32))
    b3p = jnp.zeros((1, C_P), jnp.float32).at[:, :C].set(
        b3.reshape(1, C).astype(jnp.float32))
    return dict(w1=w1, b1=b1p, w2=w2, b2=b2p, w3=w3, b3=b3p,
                H=H, C=C, H_P=H_P, C_P=C_P)


def mlp_forward_packed(x, params, *, task_id=None, n_classes=None,
                       batch_tile=256):
    """Fused 3-layer MLP forward using pre-packed parameters."""
    cdt = params["w1"].dtype
    H_P, C_P, C = params["H_P"], params["C_P"], params["C"]

    x = x.reshape(-1, 784).astype(cdt)
    B = x.shape[0]

    # Batch tile: as large as possible (MXU occupancy / per-step overhead),
    # but keep >= 2 grid steps when the batch allows so the "parallel" axis
    # can be sharded across v7x's two TensorCores.
    TB = min(int(batch_tile), _round_up(B, 8))
    TB = _round_up(TB, 8)
    if _round_up(B, TB) // TB < 2 and TB >= 16:
        TB = _round_up(TB // 2, 8)
    Bp = _round_up(B, TB)
    if Bp != B:
        x = jnp.zeros((Bp, 784), cdt).at[:B, :].set(x)

    # Right-size the scoped VMEM request from actual tile sizes (headroom for
    # v7x's 64 MiB physical VMEM).
    isz = 2 if cdt == jnp.bfloat16 else 4
    weight_bytes = (784 * H_P + H_P * H_P + H_P * C_P) * isz * 2   # dbl-buffered
    io_bytes = (TB * 784 * isz + TB * C_P * 4) * 2                 # dbl-buffered
    act_bytes = TB * H_P * 4 * 3                                   # f32 temps
    vmem_limit = int(min(max(weight_bytes + io_bytes + act_bytes + (8 << 20),
                             16 << 20), 48 << 20))

    grid = (Bp // TB,)
    out = pl.pallas_call(
        mlp_kernel,
        out_shape=jax.ShapeDtypeStruct((Bp, C_P), jnp.float32),
        grid=grid,
        in_specs=[
            pl.BlockSpec((TB, 784), lambda i: (i, 0)),    # full last dim (784)
            pl.BlockSpec((784, H_P), lambda i: (0, 0)),   # resident weights
            pl.BlockSpec((1, H_P), lambda i: (0, 0)),
            pl.BlockSpec((H_P, H_P), lambda i: (0, 0)),
            pl.BlockSpec((1, H_P), lambda i: (0, 0)),
            pl.BlockSpec((H_P, C_P), lambda i: (0, 0)),
            pl.BlockSpec((1, C_P), lambda i: (0, 0)),
        ],
        out_specs=pl.BlockSpec((TB, C_P), lambda i: (i, 0)),
        compiler_params=pltpu.CompilerParams(
            dimension_semantics=("parallel",),
            vmem_limit_bytes=vmem_limit),
    )(x, params["w1"], params["b1"], params["w2"], params["b2"],
      params["w3"], params["b3"])

    out = out[:B, :C]

    # task_id masking (mirrors PyTorch .data.fill_(-1e11) on the complement
    # of [(task_id-1)*n_classes, task_id*n_classes) with 1-based task_id).
    if task_id is not None:
        offset1 = int((task_id - 1) * n_classes)
        offset2 = int(task_id * n_classes)
        cols = jnp.arange(C)
        keep = (cols >= offset1) & (cols < offset2)
        out = jnp.where(keep[None, :], out, jnp.float32(-100000000000.0))
    return out


def mlp_forward(x, W1, b1, W2, b2, W3, b3, *, task_id=None, n_classes=None,
                batch_tile=256, use_bf16=True):
    """Convenience wrapper: packs weights then runs the fused kernel.
    For steady-state inference, call pack_mlp_params once and reuse."""
    params = pack_mlp_params(W1, b1, W2, b2, W3, b3, use_bf16=use_bf16)
    return mlp_forward_packed(x, params, task_id=task_id, n_classes=n_classes,
                              batch_tile=batch_tile)


def _reference_forward(x, W1, b1, W2, b2, W3, b3):
    """Plain-JAX reference mirroring the PyTorch MLP (eval mode)."""
    x = x.reshape(-1, 784)
    h = jnp.maximum(x @ W1.T + b1, 0.0)
    h = jnp.maximum(h @ W2.T + b2, 0.0)
    return h @ W3.T + b3


if __name__ == "__main__":
    # MLP(hiddens=256, config={'classes': 5, 'total_classes': 10, 'dropout': p})
    B, hiddens, total_classes, n_classes = 64, 256, 10, 5

    key = jax.random.PRNGKey(0)
    ks = jax.random.split(key, 7)
    x = jax.random.normal(ks[0], (B, 1, 28, 28), dtype=jnp.float32)  # MNIST-like

    # PyTorch nn.Linear weight layout: (out_features, in_features)
    W1 = jax.random.normal(ks[1], (hiddens, 784), dtype=jnp.float32) * 0.05
    b1 = jax.random.normal(ks[2], (hiddens,), dtype=jnp.float32) * 0.1
    W2 = jax.random.normal(ks[3], (hiddens, hiddens), dtype=jnp.float32) * 0.05
    b2 = jax.random.normal(ks[4], (hiddens,), dtype=jnp.float32) * 0.1
    W3 = jax.random.normal(ks[5], (total_classes, hiddens), dtype=jnp.float32) * 0.05
    b3 = jax.random.normal(ks[6], (total_classes,), dtype=jnp.float32) * 0.1

    ref = jax.block_until_ready(_reference_forward(x, W1, b1, W2, b2, W3, b3))

    # 1) f32 path: exact verification against the reference.
    params_f32 = pack_mlp_params(W1, b1, W2, b2, W3, b3, use_bf16=False)
    out_f32 = jax.block_until_ready(mlp_forward_packed(x, params_f32))
    assert out_f32.shape == (B, total_classes)
    assert jnp.allclose(out_f32, ref, rtol=1e-4, atol=1e-4), "f32 mismatch vs reference"

    # 2) bf16 default (steady-state inference config): looser tolerance.
    params_bf16 = pack_mlp_params(W1, b1, W2, b2, W3, b3)  # use_bf16=True
    out_bf16 = jax.block_until_ready(mlp_forward_packed(x, params_bf16))
    assert out_bf16.shape == (B, total_classes)
    assert jnp.allclose(out_bf16, ref, rtol=5e-2, atol=1e-1), "bf16 mismatch vs reference"

    # 3) task_id masking path (task_id=2 keeps columns [5, 10)).
    out_task = jax.block_until_ready(
        mlp_forward_packed(x, params_f32, task_id=2, n_classes=n_classes))
    assert jnp.allclose(out_task[:, n_classes:], ref[:, n_classes:],
                        rtol=1e-4, atol=1e-4)
    assert jnp.all(out_task[:, :n_classes] == jnp.float32(-100000000000.0))

    print("KERNEL_OK")
</pallas_src>

<mosaic_0001>
module attributes {stable_mosaic.version = 11 : i64} {
  func.func @mlp_kernel(%arg0: i32, %arg1: memref<32x784xf32, #tpu.memory_space<vmem>>, %arg2: memref<784x256xf32, #tpu.memory_space<vmem>>, %arg3: memref<1x256xf32, #tpu.memory_space<vmem>>, %arg4: memref<256x256xf32, #tpu.memory_space<vmem>>, %arg5: memref<1x256xf32, #tpu.memory_space<vmem>>, %arg6: memref<256x128xf32, #tpu.memory_space<vmem>>, %arg7: memref<1x128xf32, #tpu.memory_space<vmem>>, %arg8: memref<32x128xf32, #tpu.memory_space<vmem>>) attributes {dimension_semantics = [#tpu.dimension_semantics<parallel>], iteration_bounds = array<i64: 2>, scalar_prefetch = 0 : i64, scratch_operands = 0 : i64, tpu.core_type = #tpu.core_type<tc>, window_params = [{transform_indices = @transform_0, window_bounds = array<i64: 32, 784>}, {pipeline_mode = #tpu.pipeline_mode<synchronous>, transform_indices = @transform_1, window_bounds = array<i64: 784, 256>}, {pipeline_mode = #tpu.pipeline_mode<synchronous>, transform_indices = @transform_2, window_bounds = array<i64: 1, 256>}, {pipeline_mode = #tpu.pipeline_mode<synchronous>, transform_indices = @transform_3, window_bounds = array<i64: 256, 256>}, {pipeline_mode = #tpu.pipeline_mode<synchronous>, transform_indices = @transform_4, window_bounds = array<i64: 1, 256>}, {pipeline_mode = #tpu.pipeline_mode<synchronous>, transform_indices = @transform_5, window_bounds = array<i64: 256, 128>}, {pipeline_mode = #tpu.pipeline_mode<synchronous>, transform_indices = @transform_6, window_bounds = array<i64: 1, 128>}, {transform_indices = @transform_7, window_bounds = array<i64: 32, 128>}]} {
    %c0 = arith.constant 0 : index
    %c0_0 = arith.constant 0 : index
    %0 = vector.load %arg1[%c0, %c0_0] : memref<32x784xf32, #tpu.memory_space<vmem>>, vector<32x784xf32>
    %c0_1 = arith.constant 0 : index
    %c0_2 = arith.constant 0 : index
    %1 = vector.load %arg3[%c0_1, %c0_2] : memref<1x256xf32, #tpu.memory_space<vmem>>, vector<1x256xf32>
    %c0_3 = arith.constant 0 : index
    %c0_4 = arith.constant 0 : index
    %2 = vector.load %arg5[%c0_3, %c0_4] : memref<1x256xf32, #tpu.memory_space<vmem>>, vector<1x256xf32>
    %c0_5 = arith.constant 0 : index
    %c0_6 = arith.constant 0 : index
    %3 = vector.load %arg7[%c0_5, %c0_6] : memref<1x128xf32, #tpu.memory_space<vmem>>, vector<1x128xf32>
    %c0_7 = arith.constant 0 : index
    %c0_8 = arith.constant 0 : index
    %4 = vector.load %arg2[%c0_7, %c0_8] : memref<784x256xf32, #tpu.memory_space<vmem>>, vector<784x256xf32>
    %cst = arith.constant dense<0.000000e+00> : vector<32x256xf32>
    %5 = tpu.matmul %0, %4, %cst {dimension_numbers = #tpu.dot_dimension_numbers<[1], [0], [0], [1], [0, 0, 1, 1], [], []>} : vector<32x784xf32>, vector<784x256xf32>, vector<32x256xf32> -> vector<32x256xf32>
    %6 = vector.broadcast %1 : vector<1x256xf32> to vector<32x256xf32>
    %7 = arith.addf %5, %6 : vector<32x256xf32>
    %cst_9 = arith.constant 0.000000e+00 : f32
    %8 = vector.broadcast %cst_9 : f32 to vector<32x256xf32>
    %9 = arith.maximumf %7, %8 : vector<32x256xf32>
    %c0_10 = arith.constant 0 : index
    %c0_11 = arith.constant 0 : index
    %10 = vector.load %arg4[%c0_10, %c0_11] : memref<256x256xf32, #tpu.memory_space<vmem>>, vector<256x256xf32>
    %cst_12 = arith.constant dense<0.000000e+00> : vector<32x256xf32>
    %11 = tpu.matmul %9, %10, %cst_12 {dimension_numbers = #tpu.dot_dimension_numbers<[1], [0], [0], [1], [0, 0, 1, 1], [], []>} : vector<32x256xf32>, vector<256x256xf32>, vector<32x256xf32> -> vector<32x256xf32>
    %12 = vector.broadcast %2 : vector<1x256xf32> to vector<32x256xf32>
    %13 = arith.addf %11, %12 : vector<32x256xf32>
    %cst_13 = arith.constant 0.000000e+00 : f32
    %14 = vector.broadcast %cst_13 : f32 to vector<32x256xf32>
    %15 = arith.maximumf %13, %14 : vector<32x256xf32>
    %c0_14 = arith.constant 0 : index
    %c0_15 = arith.constant 0 : index
    %16 = vector.load %arg6[%c0_14, %c0_15] : memref<256x128xf32, #tpu.memory_space<vmem>>, vector<256x128xf32>
    %cst_16 = arith.constant dense<0.000000e+00> : vector<32x128xf32>
    %17 = tpu.matmul %15, %16, %cst_16 {dimension_numbers = #tpu.dot_dimension_numbers<[1], [0], [0], [1], [0, 0, 1, 1], [], []>} : vector<32x256xf32>, vector<256x128xf32>, vector<32x128xf32> -> vector<32x128xf32>
    %18 = vector.broadcast %3 : vector<1x128xf32> to vector<32x128xf32>
    %19 = arith.addf %17, %18 : vector<32x128xf32>
    %c0_17 = arith.constant 0 : index
    %c0_18 = arith.constant 0 : index
    %20 = vector.load %arg8[%c0_17, %c0_18] : memref<32x128xf32, #tpu.memory_space<vmem>>, vector<32x128xf32>
    tpu.vector_store %arg8[%c0_17, %c0_18], %19 {strides = array<i32>} : memref<32x128xf32, #tpu.memory_space<vmem>>, vector<32x128xf32>,
    return
  }
  func.func @transform_0(%arg0: i32) -> (i32, i32) {
    %c0_i32 = arith.constant 0 : i32
    %c0_i32_0 = arith.constant 0 : i32
    return %arg0, %c0_i32 : i32, i32
  }
  func.func @transform_1(%arg0: i32) -> (i32, i32) {
    %c0_i32 = arith.constant 0 : i32
    %c0_i32_0 = arith.constant 0 : i32
    %c0_i32_1 = arith.constant 0 : i32
    return %c0_i32, %c0_i32_0 : i32, i32
  }
  func.func @transform_2(%arg0: i32) -> (i32, i32) {
    %c0_i32 = arith.constant 0 : i32
    %c0_i32_0 = arith.constant 0 : i32
    %c0_i32_1 = arith.constant 0 : i32
    return %c0_i32, %c0_i32_0 : i32, i32
  }
  func.func @transform_3(%arg0: i32) -> (i32, i32) {
    %c0_i32 = arith.constant 0 : i32
    %c0_i32_0 = arith.constant 0 : i32
    %c0_i32_1 = arith.constant 0 : i32
    return %c0_i32, %c0_i32_0 : i32, i32
  }
  func.func @transform_4(%arg0: i32) -> (i32, i32) {
    %c0_i32 = arith.constant 0 : i32
    %c0_i32_0 = arith.constant 0 : i32
    %c0_i32_1 = arith.constant 0 : i32
    return %c0_i32, %c0_i32_0 : i32, i32
  }
  func.func @transform_5(%arg0: i32) -> (i32, i32) {
    %c0_i32 = arith.constant 0 : i32
    %c0_i32_0 = arith.constant 0 : i32
    %c0_i32_1 = arith.constant 0 : i32
    return %c0_i32, %c0_i32_0 : i32, i32
  }
  func.func @transform_6(%arg0: i32) -> (i32, i32) {
    %c0_i32 = arith.constant 0 : i32
    %c0_i32_0 = arith.constant 0 : i32
    %c0_i32_1 = arith.constant 0 : i32
    return %c0_i32, %c0_i32_0 : i32, i32
  }
  func.func @transform_7(%arg0: i32) -> (i32, i32) {
    %c0_i32 = arith.constant 0 : i32
    %c0_i32_0 = arith.constant 0 : i32
    return %arg0, %c0_i32 : i32, i32
  }
}

</mosaic_0001>

<bundles_post_ra>
// kernel: tpu_custom_call.1
= control target key start
LH: loop header
LB: loop body
LE: loop exit
PB: predicated region body
PF: predicated region fallthrough
CT: control target
= control target key end

     0   :  { %12 = vsyncpa [#allocation3], 0  ;;  %s2411_s0 = inlined_call_operand.hbm [shape: f32[64,784], index: 0, kind: input, shape index: {}]   ;;  %s2412_s1 = inlined_call_operand.hbm [shape: f32[784,256], index: 1, kind: input, shape index: {}]   ;;  %s2413_s2 = inlined_call_operand.vmem [shape: f32[1,256], index: 2, kind: input, shape index: {}]   ;;  %s2414_s3 = inlined_call_operand.hbm [shape: f32[256,256], index: 3, kind: input, shape index: {}]   ;;  %s2415_s4 = inlined_call_operand.vmem [shape: f32[1,256], index: 4, kind: input, shape index: {}]   ;;  %s2416_s5 = inlined_call_operand.hbm [shape: f32[256,128], index: 5, kind: input, shape index: {}]   ;;  %s2417_s6 = inlined_call_operand.vmem [shape: f32[1,128], index: 6, kind: input, shape index: {}]   ;;  %s2418_s7 = inlined_call_operand.hbm [shape: f32[64,128], index: 7, kind: output, shape index: {}]  }
   0x1   :  { %14 = vsyncpa [#allocation3 + $0x1], 0 }
   0x2   :  { %15 = vsyncpa [#allocation6], 0 }
   0x3   :  { %16 = vsyncpa [#allocation9], 0 }
   0x4   :  { %17 = vsyncpa [#allocation4], 0 }
   0x5   :  { %19 = vsyncpa [#allocation4 + $0x1], 0  ;;  %s2100_s24 = smov 0   ;;  %s2102_s25 = smov 0  }
   0x6   :  { %s2104_s26 = smov 0   ;;  %s2106_s27 = smov 0  }
   0x7 LB: > { %s2121_s28 = sadd.s32 4294967295, %s2044_s27   ;;  %s1374_s29 = sadd.s32 4294967294, %s2044_s27   ;;  %s2044_s27 = sphi %s2106_s27, %s2444_s27   ;;  %s2040_s26 = sphi %s2104_s26, %s2443_s26   ;;  %s2036_s25 = sphi %s2102_s25, %s2442_s25   ;;  %s2032_s24 = sphi %s2100_s24, %s2441_s24  }
   0x8   : > { %p45_p0 = scmp.ne.s32.totalorder %s2036_s25, %s2032_s24  ;;  %p2419_p1 = scmp.eq.s32.totalorder %s2121_s28, 0 }
   0x9   : > { %p201_p3 = scmp.eq.s32.totalorder %s1374_s29, 1  ;;  %p1375_p5 = scmp.ge.s32.totalorder %s2044_s27, 1 }
   0xa   : > { %p2130_p4 = por %p2419_p1, %p45_p0  ;;  %p208_p7 = scmp.lt.s32.totalorder %s2044_s27, 3 }
   0xb   : > { %p2135_p6 = por %p201_p3, %p45_p0  ;;  %s2046_s10 = smov [#allocation5]  }
   0xc   : > { %s2423_s30 = scalar_select %p2130_p4, 1, 0 }
   0xd   : > { %s2424_s8 = scalar_select %p2135_p6, 1, 0 }
   0xe   : > { %p2140_p8 = pnand %p1375_p5, %p208_p7  ;;  %s220_s11 = sshll.u32 %s2046_s10, 4  ;;  %s2144_s11 = int_to_ptr.vmem [resolvable:$true] %s220_s11 }
   0xf   : > { %2425 = sst [smem:[#allocation15_spill]] %s2424_s8  ;;  %s2047_s13 = smov [#allocation7]  }
  0x10   : > { %s2426_s9 = scalar_select %p2140_p8, 1, 0 }
  0x11   : > { %p1786_p9 = pneg %p2140_p8  ;;  %s236_s14 = sshll.u32 %s2047_s13, 4  ;;  %s2155_s14 = int_to_ptr.vmem [resolvable:$true] %s236_s14 }
  0x12   : > { %s2048_s15 = smov [#allocation8]   ;;  %s1856_s19 = scalar_lea.hbm %s2412_s1, 25088 }
  0x13   : > { %p2151_p11 = pnand %p1786_p9, %p2419_p1  ;;  %s2157_s16 = sshll.u32 %s2048_s15, 4  ;;  %s253_s16 = int_to_ptr.vmem [resolvable:$true] %s2157_s16 }
  0x14   : > { %p1857_p12 = scmp.ne.s32.totalorder %s2412_s1, %s1856_s19  ;;  %p1863_p5 = scmp.lt.u32.totalorder %s1856_s19, %s2412_s1 }
  0x15   : > { %p2167_p13 = pneg %p2151_p11 }
  0x17   : > { %p1859_p0 = pnand %p2167_p13, %p1857_p12 }
  0x19   : > { %p1860_p3 = pneg %p1859_p0 }
  0x1b   : > { %p1865_p7 = pnand %p1863_p5, %p1860_p3 }
  0x1d   : > { %1868 = shalt.err (!%p1865_p7)
}
  0x1e   : > { %s1869_s10 = scalar_lea.vmem %s2144_s11, 25088  ;;  %p1877_p2 = scmp.lt.s32.totalorder %s2144_s11, %s2144_s11 }
  0x1f   : > { %p1870_p9 = scmp.ne.s32.totalorder %s2144_s11, %s1869_s10  ;;  %p1878_p6 = scmp.lt.s32.totalorder %s1869_s10, %s1869_s10 }
  0x21   : > { %p1872_p10 = pnand %p1870_p9, %p2167_p13  ;;  %p1879_p12 = por %p1878_p6, %p1877_p2 }
  0x23   : > { %p1873_p1 = pneg %p1872_p10 }
  0x25   : > { %p1880_p0 = pnand %p1879_p12, %p1873_p1 }
  0x27   : > { %1883 = shalt.err (!%p1880_p0)
}
  0x28   : > { %s2049_s13 = smov 256   ;;  %s2050_s15 = smov 16  }
  0x29   : > { %1789 = dma.hbm_to_vmem [thread:$0]  (!%p2151_p11), %s2412_s1, 25088, %s2144_s11, [#allocation6], %s2049_s13, %s2049_s13, %s2050_s15  }
  0x2a   : > { %s1884_s21 = scalar_lea.hbm %s2414_s3, 8192 }
  0x2b   : > { %p1885_p2 = scmp.ne.s32.totalorder %s2414_s3, %s1884_s21  ;;  %p1891_p10 = scmp.lt.u32.totalorder %s1884_s21, %s2414_s3 }
  0x2d   : > { %p1887_p1 = pnand %p1885_p2, %p2167_p13 }
  0x2f   : > { %p1888_p6 = pneg %p1887_p1 }
  0x31   : > { %p1893_p3 = pnand %p1891_p10, %p1888_p6 }
  0x33   : > { %1896 = shalt.err (!%p1893_p3)
}
  0x34   : > { %s1897_s11 = scalar_lea.vmem %s2155_s14, 8192  ;;  %p1905_p12 = scmp.lt.s32.totalorder %s2155_s14, %s2155_s14 }
  0x35   : > { %p1898_p5 = scmp.ne.s32.totalorder %s2155_s14, %s1897_s11  ;;  %p1906_p0 = scmp.lt.s32.totalorder %s1897_s11, %s1897_s11 }
  0x37   : > { %p1900_p7 = pnand %p1898_p5, %p2167_p13  ;;  %p1907_p2 = por %p1906_p0, %p1905_p12 }
  0x39   : > { %p1901_p9 = pneg %p1900_p7 }
  0x3b   : > { %p1908_p1 = pnand %p1907_p2, %p1901_p9 }
  0x3d   : > { %1911 = shalt.err (!%p1908_p1)
}
  0x3e   : > { %1792 = dma.hbm_to_vmem [thread:$0]  (!%p2151_p11), %s2414_s3, 8192, %s2155_s14, [#allocation6], %s2049_s13, %s2049_s13, %s2050_s15  }
  0x3f   : > { %s1912_s20 = scalar_lea.hbm %s2416_s5, 4096 }
  0x40   : > { %p1913_p6 = scmp.ne.s32.totalorder %s2416_s5, %s1912_s20  ;;  %p1919_p5 = scmp.lt.u32.totalorder %s1912_s20, %s2416_s5 }
  0x42   : > { %p1915_p10 = pnand %p1913_p6, %p2167_p13 }
  0x44   : > { %p1916_p3 = pneg %p1915_p10 }
  0x46   : > { %p1921_p7 = pnand %p1919_p5, %p1916_p3 }
  0x48   : > { %1924 = shalt.err (!%p1921_p7)
}
  0x49   : > { %s1925_s11 = scalar_lea.vmem %s253_s16, 4096  ;;  %p1933_p2 = scmp.lt.s32.totalorder %s253_s16, %s253_s16 }
  0x4a   : > { %p1926_p9 = scmp.ne.s32.totalorder %s253_s16, %s1925_s11  ;;  %p1934_p1 = scmp.lt.s32.totalorder %s1925_s11, %s1925_s11 }
  0x4c   : > { %p1928_p12 = pnand %p1926_p9, %p2167_p13  ;;  %p1935_p4 = por %p1934_p1, %p1933_p2 }
  0x4e   : > { %p1929_p0 = pneg %p1928_p12 }
  0x50   : > { %p1936_p8 = pnand %p1935_p4, %p1929_p0 }
  0x52   : > { %1939 = shalt.err (!%p1936_p8)
}
  0x53   : > { %s2051_s14 = smov 128   ;;  %s2052_s22 = smov 8  }
  0x54   : > { %1795 = dma.hbm_to_vmem [thread:$0]  (!%p2151_p11), %s2416_s5, 4096, %s253_s16, [#allocation9], %s2051_s14, %s2051_s14, %s2052_s22  }
  0x55   : > { %s2231_s8 = sadd.s32 1, %s2044_s27   ;;  %s32_s18 = sadd.s32 1, %s2040_s26 }
  0x56   : > { %s29_s17 = ssub.s32 %s2044_s27, %s2231_s8  ;;  %p39_p8 = scmp.ne.s32.totalorder %s2040_s26, %s2036_s25 }
  0x57   : > { %p30_p4 = scmp.eq.s32.totalorder %s29_s17, 0  ;;  %p40_p13 = scmp.eq.s32.totalorder %s2044_s27, 0 }
  0x58   : > { %p1807_p6 = scmp.lt.s32.totalorder %s2044_s27, 2  ;;  %p2429_p3 = scmp.eq.s32.totalorder %s2121_s28, 1 }
  0x59   : > { %s2241_s19 = scalar_select %p30_p4, %s2040_s26, %s32_s18  }
  0x5a   : > { %p41_p10 = por %p40_p13, %p39_p8  ;;  %p2245_p5 = por %p2429_p3, %p39_p8 }
  0x5b   : > { %s269_s12 = sand.u32 1, %s2040_s26   ;;  %s1768_s21 = smul.u32 3584, %s2044_s27 }
  0x5c   : > { %s1767_s16 = smul.u32 224, %s269_s12  ;;  %p2256_p11 = pnand %p1807_p6, %p41_p10 }
  0x5d   : > { %s2254_s10 = scalar_lea.hbm %s2411_s0, %s1768_s21  ;;  %s2262_s13 = scalar_lea.sflag [#allocation3], %s269_s12 }
  0x5e   : > { %s273_s14 = scalar_lea.vmem [#allocation2], %s1767_s16  ;;  %s1940_s15 = scalar_lea.hbm %s2254_s10, 3584 }
  0x5f   : > { %s281_s22 = sshll.u32 %s273_s14, 4  ;;  %p1941_p7 = scmp.ne.s32.totalorder %s2254_s10, %s1940_s15  ;;  %s2260_s22 = int_to_ptr.vmem [resolvable:$true] %s281_s22 }
  0x60   : > { %p1942_p9 = pneg %p2256_p11  ;;  %s1945_s21 = scalar_lea.hbm %s2411_s0, 7168 }
  0x61   : > { %p1946_p2 = scmp.lt.u32.totalorder %s2254_s10, %s2411_s0  ;;  %p1947_p1 = scmp.lt.u32.totalorder %s1945_s21, %s1940_s15 }
  0x62   : > { %p1943_p12 = pnand %p1942_p9, %p1941_p7  ;;  %p1949_p8 = scmp.lt.u32.totalorder %s1940_s15, %s2254_s10 }
  0x63   : > { %p1948_p4 = por %p1947_p1, %p1946_p2 }
  0x64   : > { %p1944_p0 = pneg %p1943_p12 }
  0x65   : > { %p1950_p13 = por %p1949_p8, %p1948_p4 }
  0x67   : > { %p1951_p6 = pnand %p1950_p13, %p1944_p0 }
  0x69   : > { %1954 = shalt.err (!%p1951_p6)
}
  0x6a   : > { %s1955_s12 = scalar_lea.vmem %s2260_s22, 3584  ;;  %s2053_s16 = smov [#allocation2]  }
  0x6b   : > { %p1956_p10 = scmp.ne.s32.totalorder %s2260_s22, %s1955_s12  ;;  %s1960_s14 = sshll.u32 %s2053_s16, 4  ;;  %s1961_s14 = int_to_ptr.vmem [resolvable:$false] %s1960_s14 }
  0x6c   : > { %s1962_s17 = scalar_lea.vmem %s1961_s14, 7168  ;;  %p1963_p12 = scmp.lt.s32.totalorder %s2260_s22, %s1961_s14 }
  0x6d   : > { %p1958_p3 = pnand %p1956_p10, %p1942_p9  ;;  %p1964_p2 = scmp.lt.s32.totalorder %s1962_s17, %s1955_s12 }
  0x6f   : > { %p1959_p7 = pneg %p1958_p3  ;;  %p1965_p1 = por %p1964_p2, %p1963_p12 }
  0x71   : > { %p1966_p4 = pnand %p1965_p1, %p1959_p7 }
  0x73   : > { %1969 = shalt.err (!%p1966_p4)
}
  0x74   : > { %s2054_s15 = smov 896   ;;  %s2055_s18 = smov 56  }
  0x75   : > { %1799 = dma.hbm_to_vmem [thread:$0]  (!%p2256_p11), %s2254_s10, 3584, %s2260_s22, %s2262_s13, %s2054_s15, %s2054_s15, %s2055_s18  }
  0x76   : > { %p2432_p9 = scmp.ne.s32.totalorder %s2426_s9, 0 }
  0x77   : > { %s2293_s21 = sand.u32 (!%p2432_p9), 1, %s2036_s25   ;;  %p2433_p0 = scmp.ne.s32.totalorder (!%p2432_p9), %s2423_s30, 0 }
  0x78   : > { %293 = sbr.rel (%p2432_p9) target bundleno = 962 (0x3c2), region = 48  ;;  %s296_s29 = scalar_lea.sflag (!%p2432_p9), [#allocation3], %s2293_s21 }
  0x79   : > { %s1769_s23 = smul.u32 (!%p2432_p9), 224, %s2293_s21 }
  0x7b   : > { %s2297_s12 = scalar_lea.vmem (!%p2432_p9), [#allocation2], %s1769_s23 }
  0x7f   : > { %2015 = dma.done.wait (%p2433_p0), %s296_s29, 3584  }
  0x80   : > { %2017 = vsyncadd (%p2433_p0), %s296_s29, 4294963712  ;;  %p2434_p11 = scmp.eq.s32.totalorder %s2121_s28, 0 }
  0x82   : > { %2019 = dma.done.wait (%p2434_p11), [#allocation6], 33280   ;;  %p2435_p8 = pmov %p2434_p11 }
  0x84   : > { %2021 = vsyncadd (%p2435_p8), [#allocation6], 4294934016  ;;  %p2436_p13 = pmov %p2435_p8 }
  0x85   : > { %p2437_p6 = pmov %p2435_p8 }
  0x86   : > { %2023 = dma.done.wait (%p2436_p13), [#allocation9], 4096  }
  0x87   : > { %2025 = vsyncadd (%p2437_p6), [#allocation9], 4294963200  ;;  %v440_v0 = vld [vmem:[#allocation5 + $0x208] sm:$0xff]  ;;  %v442_v1 = vld [vmem:[#allocation5 + $0x218] sm:$0xff]  ;;  %vm582_vm0 = vcmask 130048   ;;  %s1387_s22 = sshll.u32 %s2293_s21, 5 }
  0x88   : > { %v439_v2 = vld [vmem:[#allocation5 + $0x200] sm:$0xff]  ;;  %v1507_v3 = vpack.c.bf16 %v442_v1, %v440_v0  ;;  %v441_v4 = vld [vmem:[#allocation5 + $0x210] sm:$0xff]  ;;  %v444_v5 = vld [vmem:[#allocation5 + $0x228] sm:$0xff]  ;;  %s341_s14 = scalar_lea.vmem [#allocation10], %s1387_s22  ;;  %s1398_s15 = sshll.u32 %s2121_s28, 9 }
  0x89   : > { %v446_v6 = vld [vmem:[#allocation5 + $0x238] sm:$0xff]  ;;  %v1509_v7 = vpack.c.bf16 %v441_v4, %v439_v2  ;;  %v443_v9 = vld [vmem:[#allocation5 + $0x220] sm:$0xff]  ;;  %v445_v10 = vld [vmem:[#allocation5 + $0x230] sm:$0xff]  ;;  %s1272_s17 = sshll.u32 %s341_s14, 4  ;;  %s2367_s29 = scalar_lea.hbm %s2418_s7, %s1398_s15  ;;  %s2362_s17 = int_to_ptr.vmem [resolvable:$true] %s1272_s17 }
  0x8a   : > { %v1511_v8 = vpack.c.bf16 %v446_v6, %v444_v5  ;;  %v448_v11 = vld [vmem:[#allocation5 + $0x248] sm:$0xff]  ;;  %1508 = vmatprep.subr.bf16.mxu0 %v1507_v3  ;;  %v450_v12 = vld [vmem:[#allocation5 + $0x258] sm:$0xff]  ;;  %v1513_v13 = vpack.c.bf16 %v445_v10, %v443_v9  ;;  %v447_v15 = vld [vmem:[#allocation5 + $0x240] sm:$0xff]  ;;  %s1970_s30 = scalar_lea.vmem %s2362_s17, 512  ;;  %s2057_s28 = smov [#allocation10]  }
  0x8b   : > { %1510 = vmatpush1.bf16.msra.mxu0 %v1509_v7  ;;  %v1515_v14 = vpack.c.bf16 %v450_v12, %v448_v11  ;;  %v449_v16 = vld [vmem:[#allocation5 + $0x250] sm:$0xff]  ;;  %v452_v17 = vld [vmem:[#allocation5 + $0x268] sm:$0xff]  ;;  %v454_v18 = vld [vmem:[#allocation5 + $0x278] sm:$0xff]  ;;  %p1971_p10 = scmp.ne.s32.totalorder %s2362_s17, %s1970_s30  ;;  %s1974_s9 = sshll.u32 %s2057_s28, 4  ;;  %s1975_s9 = int_to_ptr.vmem [resolvable:$false] %s1974_s9 }
  0x8c   : > { %1512 = vmatprep.subr.bf16.mxu0 %v1511_v8  ;;  %v1517_v19 = vpack.c.bf16 %v449_v16, %v447_v15  ;;  %v1519_v20 = vpack.c.bf16 %v454_v18, %v452_v17  ;;  %v451_v21 = vld [vmem:[#allocation5 + $0x260] sm:$0xff]  ;;  %v453_v22 = vld [vmem:[#allocation5 + $0x270] sm:$0xff]  ;;  %v456_v23 = vld [vmem:[#allocation5 + $0x288] sm:$0xff]  ;;  %s1976_s10 = scalar_lea.vmem %s1975_s9, 1024  ;;  %p1977_p12 = scmp.lt.s32.totalorder %s2362_s17, %s1975_s9 }
  0x8d   : > { %v458_v24 = vld [vmem:[#allocation5 + $0x298] sm:$0xff]  ;;  %v1521_v25 = vpack.c.bf16 %v453_v22, %v451_v21  ;;  %v455_v27 = vld [vmem:[#allocation5 + $0x280] sm:$0xff]  ;;  %v457_v28 = vld [vmem:[#allocation5 + $0x290] sm:$0xff]  ;;  %p1972_p3 = pnand %p1971_p10, %p2245_p5  ;;  %p1978_p2 = scmp.lt.s32.totalorder %s1976_s10, %s1970_s30 }
  0x8e   : > { %v1523_v26 = vpack.c.bf16 %v458_v24, %v456_v23  ;;  %v460_v29 = vld [vmem:[#allocation5 + $0x2a8] sm:$0xff]  ;;  %v462_v30 = vld [vmem:[#allocation5 + $0x2b8] sm:$0xff]  ;;  %v1525_v31 = vpack.c.bf16 %v457_v28, %v455_v27  ;;  %v459_v33 = vld [vmem:[#allocation5 + $0x2a0] sm:$0xff] }
  0x8f   : > { %1514 = vmatpush1.bf16.msra.mxu0 %v1513_v13  ;;  %v1527_v32 = vpack.c.bf16 %v462_v30, %v460_v29  ;;  %v461_v34 = vld [vmem:[#allocation5 + $0x2b0] sm:$0xff]  ;;  %v464_v35 = vld [vmem:[#allocation5 + $0x2c8] sm:$0xff]  ;;  %v466_v36 = vld [vmem:[#allocation5 + $0x2d8] sm:$0xff]  ;;  %p1973_p7 = pneg %p1972_p3  ;;  %p1979_p1 = por %p1978_p2, %p1977_p12 }
  0x90   : > { %1516 = vmatprep.subr.bf16.mxu0 %v1515_v14  ;;  %v1529_v37 = vpack.c.bf16 %v461_v34, %v459_v33  ;;  %v1531_v38 = vpack.c.bf16 %v466_v36, %v464_v35  ;;  %v463_v39 = vld [vmem:[#allocation5 + $0x2c0] sm:$0xff]  ;;  %v465_v40 = vld [vmem:[#allocation5 + $0x2d0] sm:$0xff]  ;;  %v347_v41 = vld [vmem:[%s2297_s12 + $0x18] sm:$0xff] }
  0x91   : > { %v468_v42 = vld [vmem:[#allocation5 + $0x2e8] sm:$0xff]  ;;  %v470_v43 = vld [vmem:[#allocation5 + $0x2f8] sm:$0xff]  ;;  %748 = vmatprep.mubr.f32.mxu0 %v347_v41  ;;  %v1533_v44 = vpack.c.bf16 %v465_v40, %v463_v39  ;;  %v467_v46 = vld [vmem:[#allocation5 + $0x2e0] sm:$0xff]  ;;  %p1980_p4 = pnand %p1979_p1, %p1973_p7 }
  0x92   : > { %v1535_v45 = vpack.c.bf16 %v470_v43, %v468_v42  ;;  %v469_v47 = vld [vmem:[#allocation5 + $0x2f0] sm:$0xff]  ;;  %v472_v48 = vld [vmem:[#allocation5 + $0x308] sm:$0xff]  ;;  %v474_v49 = vld [vmem:[#allocation5 + $0x318] sm:$0xff] }
  0x93   : > { %1518 = vmatpush1.bf16.msra.mxu0 %v1517_v19  ;;  %v376_v50 = vld [vmem:[#allocation5 + $0x8] sm:$0xff]  ;;  %v378_v51 = vld [vmem:[#allocation5 + $0x18] sm:$0xff]  ;;  %v1537_v52 = vpack.c.bf16 %v469_v47, %v467_v46  ;;  %v471_v53 = vld [vmem:[#allocation5 + $0x300] sm:$0xff]  ;;  %v1539_v57 = vpack.c.bf16 %v474_v49, %v472_v48 }
  0x94   : > { %1520 = vmatprep.subr.bf16.mxu0 %v1519_v20  ;;  %v1443_v54 = vpack.c.bf16 %v378_v51, %v376_v50  ;;  %v375_v55 = vld [vmem:[#allocation5] sm:$0xff]  ;;  %v377_v56 = vld [vmem:[#allocation5 + $0x10] sm:$0xff]  ;;  %v476_v59 = vld [vmem:[#allocation5 + $0x328] sm:$0xff] }
  0x95   : > { %v473_v58 = vld [vmem:[#allocation5 + $0x310] sm:$0xff]  ;;  %v478_v60 = vld [vmem:[#allocation5 + $0x338] sm:$0xff]  ;;  %v1445_v61 = vpack.c.bf16 %v377_v56, %v375_v55  ;;  %v380_v62 = vld [vmem:[#allocation5 + $0x28] sm:$0xff] }
  0x96   : > { %1444 = vmatprep.subr.bf16.mxu1 %v1443_v54  ;;  %v382_v63 = vld [vmem:[#allocation5 + $0x38] sm:$0xff]  ;;  %v379_v0 = vld [vmem:[#allocation5 + $0x20] sm:$0xff]  ;;  %v381_v2 = vld [vmem:[#allocation5 + $0x30] sm:$0xff]  ;;  %v1541_v3 = vpack.c.bf16 %v473_v58, %v471_v53  ;;  %v1543_v8 = vpack.c.bf16 %v478_v60, %v476_v59 }
  0x97   : > { %1522 = vmatpush1.bf16.msra.mxu0 %v1521_v25  ;;  %1446 = vmatpush1.bf16.msra.mxu1 %v1445_v61  ;;  %v1447_v1 = vpack.c.bf16 %v382_v63, %v380_v62  ;;  %v475_v4 = vld [vmem:[#allocation5 + $0x320] sm:$0xff]  ;;  %v477_v5 = vld [vmem:[#allocation5 + $0x330] sm:$0xff]  ;;  %v1449_v6 = vpack.c.bf16 %v381_v2, %v379_v0  ;;  %v384_v7 = vld [vmem:[#allocation5 + $0x48] sm:$0xff] }
  0x98   : > { %1524 = vmatprep.subr.bf16.mxu0 %v1523_v26  ;;  %v386_v9 = vld [vmem:[#allocation5 + $0x58] sm:$0xff]  ;;  %v383_v10 = vld [vmem:[#allocation5 + $0x40] sm:$0xff]  ;;  %v385_v11 = vld [vmem:[#allocation5 + $0x50] sm:$0xff]  ;;  %v1545_v18 = vpack.c.bf16 %v477_v5, %v475_v4 }
  0x99   : > { %1448 = vmatprep.subr.bf16.mxu1 %v1447_v1  ;;  %v480_v12 = vld [vmem:[#allocation5 + $0x348] sm:$0xff]  ;;  %v482_v13 = vld [vmem:[#allocation5 + $0x358] sm:$0xff]  ;;  %v1451_v14 = vpack.c.bf16 %v386_v9, %v384_v7  ;;  %v1453_v15 = vpack.c.bf16 %v385_v11, %v383_v10  ;;  %v387_v20 = vld [vmem:[#allocation5 + $0x60] sm:$0xff] }
  0x9a   : > { %v388_v16 = vld [vmem:[#allocation5 + $0x68] sm:$0xff]  ;;  %v390_v17 = vld [vmem:[#allocation5 + $0x78] sm:$0xff]  ;;  %v389_v21 = vld [vmem:[#allocation5 + $0x70] sm:$0xff]  ;;  %v1547_v22 = vpack.c.bf16 %v482_v13, %v480_v12 }
  0x9b   : > { %1526 = vmatpush1.bf16.msra.mxu0 %v1525_v31  ;;  %1450 = vmatpush1.bf16.msra.mxu1 %v1449_v6  ;;  %v1455_v19 = vpack.c.bf16 %v390_v17, %v388_v16  ;;  %v479_v23 = vld [vmem:[#allocation5 + $0x340] sm:$0xff]  ;;  %v481_v24 = vld [vmem:[#allocation5 + $0x350] sm:$0xff]  ;;  %v484_v25 = vld [vmem:[#allocation5 + $0x368] sm:$0xff]  ;;  %v1457_v29 = vpack.c.bf16 %v389_v21, %v387_v20 }
  0x9c   : > { %1528 = vmatprep.subr.bf16.mxu0 %v1527_v32  ;;  %1452 = vmatprep.subr.bf16.mxu1 %v1451_v14  ;;  %v486_v26 = vld [vmem:[#allocation5 + $0x378] sm:$0xff]  ;;  %v392_v27 = vld [vmem:[#allocation5 + $0x88] sm:$0xff]  ;;  %v1549_v30 = vpack.c.bf16 %v481_v24, %v479_v23  ;;  %v483_v31 = vld [vmem:[#allocation5 + $0x360] sm:$0xff] }
  0x9d   : > { %v394_v28 = vld [vmem:[#allocation5 + $0x98] sm:$0xff]  ;;  %v391_v33 = vld [vmem:[#allocation5 + $0x80] sm:$0xff]  ;;  %v393_v34 = vld [vmem:[#allocation5 + $0x90] sm:$0xff]  ;;  %v1551_v35 = vpack.c.bf16 %v486_v26, %v484_v25 }
  0x9e   : > { %v1459_v32 = vpack.c.bf16 %v394_v28, %v392_v27  ;;  %v485_v36 = vld [vmem:[#allocation5 + $0x370] sm:$0xff]  ;;  %v488_v39 = vld [vmem:[#allocation5 + $0x388] sm:$0xff]  ;;  %v490_v40 = vld [vmem:[#allocation5 + $0x398] sm:$0xff]  ;;  %v1461_v41 = vpack.c.bf16 %v393_v34, %v391_v33 }
  0x9f   : > { %1530 = vmatpush1.bf16.msra.mxu0 %v1529_v37  ;;  %1454 = vmatpush1.bf16.msra.mxu1 %v1453_v15  ;;  %v396_v37 = vld [vmem:[#allocation5 + $0xa8] sm:$0xff]  ;;  %v1553_v42 = vpack.c.bf16 %v485_v36, %v483_v31  ;;  %v487_v43 = vld [vmem:[#allocation5 + $0x380] sm:$0xff]  ;;  %v397_v46 = vld [vmem:[#allocation5 + $0xb0] sm:$0xff]  ;;  %v1555_v47 = vpack.c.bf16 %v490_v40, %v488_v39 }
  0xa0   : > { %1532 = vmatprep.subr.bf16.mxu0 %v1531_v38  ;;  %1456 = vmatprep.subr.bf16.mxu1 %v1455_v19  ;;  %v398_v38 = vld [vmem:[#allocation5 + $0xb8] sm:$0xff]  ;;  %v489_v48 = vld [vmem:[#allocation5 + $0x390] sm:$0xff]  ;;  %v400_v49 = vld [vmem:[#allocation5 + $0xc8] sm:$0xff] }
  0xa1   : > { %v402_v50 = vld [vmem:[#allocation5 + $0xd8] sm:$0xff]  ;;  %v492_v51 = vld [vmem:[#allocation5 + $0x3a8] sm:$0xff]  ;;  %v1557_v54 = vpack.c.bf16 %v489_v48, %v487_v43  ;;  %v491_v55 = vld [vmem:[#allocation5 + $0x3a0] sm:$0xff] }
  0xa2   : > { %v1467_v56 = vpack.c.bf16 %v402_v50, %v400_v49  ;;  %v401_v58 = vld [vmem:[#allocation5 + $0xd0] sm:$0xff]  ;;  %v404_v61 = vld [vmem:[#allocation5 + $0xe8] sm:$0xff]  ;;  %v406_v62 = vld [vmem:[#allocation5 + $0xf8] sm:$0xff] }
  0xa3   : > { %1534 = vmatpush1.bf16.msra.mxu0 %v1533_v44  ;;  %1458 = vmatpush1.bf16.msra.mxu1 %v1457_v29  ;;  %v1463_v44 = vpack.c.bf16 %v398_v38, %v396_v37  ;;  %v493_v60 = vld [vmem:[#allocation5 + $0x3b0] sm:$0xff]  ;;  %v496_v63 = vld [vmem:[#allocation5 + $0x3c8] sm:$0xff]  ;;  %v498_v0 = vld [vmem:[#allocation5 + $0x3d8] sm:$0xff]  ;;  %v1471_v4 = vpack.c.bf16 %v406_v62, %v404_v61 }
  0xa4   : > { %1536 = vmatprep.subr.bf16.mxu0 %v1535_v45  ;;  %1460 = vmatprep.subr.bf16.mxu1 %v1459_v32  ;;  %v395_v45 = vld [vmem:[#allocation5 + $0xa0] sm:$0xff]  ;;  %v1561_v2 = vpack.c.bf16 %v493_v60, %v491_v55  ;;  %v405_v6 = vld [vmem:[#allocation5 + $0xf0] sm:$0xff]  ;;  %v1563_v7 = vpack.c.bf16 %v498_v0, %v496_v63  ;;  %v408_v9 = vld [vmem:[#allocation5 + $0x108] sm:$0xff] }
  0xa5   : > { %v1465_v53 = vpack.c.bf16 %v397_v46, %v395_v45  ;;  %v403_v5 = vld [vmem:[#allocation5 + $0xe0] sm:$0xff]  ;;  %v410_v10 = vld [vmem:[#allocation5 + $0x118] sm:$0xff]  ;;  %v500_v11 = vld [vmem:[#allocation5 + $0x3e8] sm:$0xff] }
  0xa6   : > { %v502_v12 = vld [vmem:[#allocation5 + $0x3f8] sm:$0xff]  ;;  %v1473_v13 = vpack.c.bf16 %v405_v6, %v403_v5  ;;  %v499_v15 = vld [vmem:[#allocation5 + $0x3e0] sm:$0xff]  ;;  %v1475_v16 = vpack.c.bf16 %v410_v10, %v408_v9  ;;  %v501_v20 = vld [vmem:[#allocation5 + $0x3f0] sm:$0xff] }
  0xa7   : > { %1538 = vmatpush1.bf16.msra.mxu0 %v1537_v52  ;;  %v494_v52 = vld [vmem:[#allocation5 + $0x3b8] sm:$0xff]  ;;  %1462 = vmatpush1.bf16.msra.mxu1 %v1461_v41  ;;  %v407_v17 = vld [vmem:[#allocation5 + $0x100] sm:$0xff]  ;;  %v1567_v19 = vpack.c.bf16 %v502_v12, %v500_v11  ;;  %v412_v21 = vld [vmem:[#allocation5 + $0x128] sm:$0xff]  ;;  %v1569_v26 = vpack.c.bf16 %v501_v20, %v499_v15 }
  0xa8   : > { %1540 = vmatprep.subr.bf16.mxu0 %v1539_v57  ;;  %1464 = vmatprep.subr.bf16.mxu1 %v1463_v44  ;;  %v399_v57 = vld [vmem:[#allocation5 + $0xc0] sm:$0xff]  ;;  %v1559_v59 = vpack.c.bf16 %v494_v52, %v492_v51  ;;  %v504_v23 = vld [vmem:[#allocation5 + $0x408] sm:$0xff]  ;;  %v506_v24 = vld [vmem:[#allocation5 + $0x418] sm:$0xff] }
  0xa9   : > { %v1469_v1 = vpack.c.bf16 %v401_v58, %v399_v57  ;;  %v411_v28 = vld [vmem:[#allocation5 + $0x120] sm:$0xff]  ;;  %v413_v29 = vld [vmem:[#allocation5 + $0x130] sm:$0xff]  ;;  %v508_v33 = vld [vmem:[#allocation5 + $0x428] sm:$0xff] }
  0xaa   : > { %v503_v31 = vld [vmem:[#allocation5 + $0x400] sm:$0xff]  ;;  %v505_v32 = vld [vmem:[#allocation5 + $0x410] sm:$0xff]  ;;  %v510_v34 = vld [vmem:[#allocation5 + $0x438] sm:$0xff]  ;;  %v1481_v38 = vpack.c.bf16 %v413_v29, %v411_v28 }
  0xab   : > { %1542 = vmatpush1.bf16.msra.mxu0 %v1541_v3  ;;  %1466 = vmatpush1.bf16.msra.mxu1 %v1465_v53  ;;  %v495_v3 = vld [vmem:[#allocation5 + $0x3c0] sm:$0xff]  ;;  %v418_v36 = vld [vmem:[#allocation5 + $0x158] sm:$0xff]  ;;  %v346_v37 = vld [vmem:[%s2297_s12 + $0x10] sm:$0xff]  ;;  %v1573_v39 = vpack.c.bf16 %v505_v32, %v503_v31  ;;  %v1575_v43 = vpack.c.bf16 %v510_v34, %v508_v33 }
  0xac   : > { %1544 = vmatprep.subr.bf16.mxu0 %v1543_v8  ;;  %1468 = vmatprep.subr.bf16.mxu1 %v1467_v56  ;;  %v497_v8 = vld [vmem:[#allocation5 + $0x3d0] sm:$0xff]  ;;  %v507_v40 = vld [vmem:[#allocation5 + $0x420] sm:$0xff]  ;;  %v512_v45 = vld [vmem:[#allocation5 + $0x448] sm:$0xff] }
  0xad   : > { %v1565_v14 = vpack.c.bf16 %v497_v8, %v495_v3  ;;  %v415_v41 = vld [vmem:[#allocation5 + $0x140] sm:$0xff]  ;;  %v509_v44 = vld [vmem:[#allocation5 + $0x430] sm:$0xff]  ;;  %v514_v48 = vld [vmem:[#allocation5 + $0x458] sm:$0xff] }
  0xae   : > { %v354_v46 = vld [vmem:[%s2297_s12 + $0x50] sm:$0xff]  ;;  %v420_v49 = vld [vmem:[#allocation5 + $0x168] sm:$0xff]  ;;  %v422_v50 = vld [vmem:[#allocation5 + $0x178] sm:$0xff]  ;;  %v1577_v53 = vpack.c.bf16 %v509_v44, %v507_v40  ;;  %v1579_v57 = vpack.c.bf16 %v514_v48, %v512_v45 }
  0xaf   : > { %1546 = vmatpush1.bf16.msra.mxu0 %v1545_v18  ;;  %1470 = vmatpush1.bf16.msra.mxu1 %v1469_v1  ;;  %v409_v18 = vld [vmem:[#allocation5 + $0x110] sm:$0xff]  ;;  %v511_v51 = vld [vmem:[#allocation5 + $0x440] sm:$0xff]  ;;  %v361_v60 = vld [vmem:[%s2297_s12 + $0x88] sm:$0xff]  ;;  %v1487_v61 = vpack.c.bf16 %v422_v50, %v420_v49 }
  0xb0   : > { %1548 = vmatprep.subr.bf16.mxu0 %v1547_v22  ;;  %1472 = vmatprep.subr.bf16.mxu1 %v1471_v4  ;;  %v414_v22 = vld [vmem:[#allocation5 + $0x138] sm:$0xff]  ;;  %v1477_v25 = vpack.c.bf16 %v409_v18, %v407_v17  ;;  %v419_v55 = vld [vmem:[#allocation5 + $0x160] sm:$0xff]  ;;  %v421_v56 = vld [vmem:[#allocation5 + $0x170] sm:$0xff] }
  0xb1   : > { %v1479_v27 = vpack.c.bf16 %v414_v22, %v412_v21  ;;  %v513_v58 = vld [vmem:[#allocation5 + $0x450] sm:$0xff]  ;;  %v518_v62 = vld [vmem:[#allocation5 + $0x478] sm:$0xff]  ;;  %v424_v63 = vld [vmem:[#allocation5 + $0x188] sm:$0xff] }
  0xb2   : > { %v426_v0 = vld [vmem:[#allocation5 + $0x198] sm:$0xff]  ;;  %v515_v1 = vld [vmem:[#allocation5 + $0x460] sm:$0xff]  ;;  %v345_v3 = vld [vmem:[%s2297_s12 + $0x8] sm:$0xff]  ;;  %v1581_v4 = vpack.c.bf16 %v513_v58, %v511_v51 }
  0xb3   : > { %1550 = vmatpush1.bf16.msra.mxu0 %v1549_v30  ;;  %1474 = vmatpush1.bf16.msra.mxu1 %v1473_v13  ;;  %v1571_v30 = vpack.c.bf16 %v506_v24, %v504_v23  ;;  %v360_v5 = vld [vmem:[%s2297_s12 + $0x80] sm:$0xff]  ;;  %v517_v9 = vld [vmem:[#allocation5 + $0x470] sm:$0xff]  ;;  %v520_v10 = vld [vmem:[#allocation5 + $0x488] sm:$0xff]  ;;  %v1491_v12 = vpack.c.bf16 %v426_v0, %v424_v63 }
  0xb4   : > { %1552 = vmatprep.subr.bf16.mxu0 %v1551_v35  ;;  %1476 = vmatprep.subr.bf16.mxu1 %v1475_v16  ;;  %v416_v35 = vld [vmem:[#allocation5 + $0x148] sm:$0xff]  ;;  %v423_v6 = vld [vmem:[#allocation5 + $0x180] sm:$0xff]  ;;  %v522_v13 = vld [vmem:[#allocation5 + $0x498] sm:$0xff] }
  0xb5   : > { %v368_v11 = vld [vmem:[%s2297_s12 + $0xc0] sm:$0xff]  ;;  %v430_v15 = vld [vmem:[#allocation5 + $0x1b8] sm:$0xff]  ;;  %659 = vmatprep.mubr.f32.mxu1 %v345_v3  ;;  %v521_v17 = vld [vmem:[#allocation5 + $0x490] sm:$0xff]  ;;  %v1587_v23 = vpack.c.bf16 %v522_v13, %v520_v10 }
  0xb6   : > { %v519_v16 = vld [vmem:[#allocation5 + $0x480] sm:$0xff]  ;;  %v367_v20 = vld [vmem:[%s2297_s12 + $0xb8] sm:$0xff]  ;;  %v429_v22 = vld [vmem:[#allocation5 + $0x1b0] sm:$0xff] }
  0xb7   : > { %1554 = vmatpush1.bf16.msra.mxu0 %v1553_v42  ;;  %1478 = vmatpush1.bf16.msra.mxu1 %v1477_v25  ;;  %v417_v42 = vld [vmem:[#allocation5 + $0x150] sm:$0xff]  ;;  %v427_v21 = vld [vmem:[#allocation5 + $0x1a0] sm:$0xff]  ;;  %v349_v24 = vld [vmem:[%s2297_s12 + $0x28] sm:$0xff]  ;;  %v1589_v31 = vpack.c.bf16 %v521_v17, %v519_v16 }
  0xb8   : > { %1556 = vmatprep.subr.bf16.mxu0 %v1555_v47  ;;  %1480 = vmatprep.subr.bf16.mxu1 %v1479_v27  ;;  %v1483_v47 = vpack.c.bf16 %v418_v36, %v416_v35  ;;  %v1485_v52 = vpack.c.bf16 %v417_v42, %v415_v41  ;;  %v434_v27 = vld [vmem:[#allocation5 + $0x1d8] sm:$0xff]  ;;  %v524_v28 = vld [vmem:[#allocation5 + $0x4a8] sm:$0xff]  ;;  %v523_v32 = vld [vmem:[#allocation5 + $0x4a0] sm:$0xff] }
  0xb9   : > { %v526_v29 = vld [vmem:[#allocation5 + $0x4b8] sm:$0xff]  ;;  %v431_v34 = vld [vmem:[#allocation5 + $0x1c0] sm:$0xff]  ;;  %v433_v35 = vld [vmem:[#allocation5 + $0x1d0] sm:$0xff] }
  0xba   : > { %v1591_v36 = vpack.c.bf16 %v526_v29, %v524_v28  ;;  %v528_v40 = vld [vmem:[#allocation5 + $0x4c8] sm:$0xff]  ;;  %v530_v41 = vld [vmem:[#allocation5 + $0x4d8] sm:$0xff]  ;;  %v1501_v42 = vpack.c.bf16 %v433_v35, %v431_v34  ;;  %v527_v44 = vld [vmem:[#allocation5 + $0x4c0] sm:$0xff] }
  0xbb   : > { %1558 = vmatpush1.bf16.msra.mxu0 %v1557_v54  ;;  %1482 = vmatpush1.bf16.msra.mxu1 %v1481_v38  ;;  %v353_v54 = vld [vmem:[%s2297_s12 + $0x48] sm:$0xff]  ;;  %v1595_v48 = vpack.c.bf16 %v530_v41, %v528_v40  ;;  %v529_v49 = vld [vmem:[#allocation5 + $0x4d0] sm:$0xff]  ;;  %v962_v51 = vld [vmem:[#allocation7 + $0x18] sm:$0xff] }
  0xbc   : > { %1560 = vmatprep.subr.bf16.mxu0 %v1559_v59  ;;  %v516_v59 = vld [vmem:[#allocation5 + $0x468] sm:$0xff]  ;;  %1484 = vmatprep.subr.bf16.mxu1 %v1483_v47  ;;  %v437_v47 = vld [vmem:[#allocation5 + $0x1f0] sm:$0xff]  ;;  %v959_v58 = vld [vmem:[#allocation7] sm:$0xff] }
  0xbd   : > { %v1583_v8 = vpack.c.bf16 %v518_v62, %v516_v59  ;;  %v436_v38 = vld [vmem:[#allocation5 + $0x1e8] sm:$0xff]  ;;  %v961_v59 = vld [vmem:[#allocation7 + $0x10] sm:$0xff]  ;;  %v966_v63 = vld [vmem:[#allocation7 + $0x38] sm:$0xff] }
  0xbe   : > { %v960_v50 = vld [vmem:[#allocation7 + $0x8] sm:$0xff]  ;;  %v344_v3 = vld [vmem:[%s2297_s12] sm:$0xff]  ;;  %v970_v13 = vld [vmem:[#allocation7 + $0x58] sm:$0xff] }
  0xbf   : > { %1562 = vmatpush1.bf16.msra.mxu0 %v1561_v2  ;;  %1486 = vmatpush1.bf16.msra.mxu1 %v1485_v52  ;;  %v1489_v2 = vpack.c.bf16 %v421_v56, %v419_v55  ;;  %v532_v52 = vld [vmem:[#allocation5 + $0x4e8] sm:$0xff]  ;;  %v1597_v55 = vpack.c.bf16 %v529_v49, %v527_v44  ;;  %v531_v56 = vld [vmem:[#allocation5 + $0x4e0] sm:$0xff]  ;;  %v351_v17 = vld [vmem:[%s2297_s12 + $0x38] sm:$0xff] }
  0xc0   : > { %1564 = vmatprep.subr.bf16.mxu0 %v1563_v7  ;;  %v425_v7 = vld [vmem:[#allocation5 + $0x190] sm:$0xff]  ;;  %1488 = vmatprep.subr.bf16.mxu1 %v1487_v61  ;;  %v964_v62 = vld [vmem:[#allocation7 + $0x28] sm:$0xff]  ;;  %v539_v16 = vld [vmem:[#allocation5 + $0x520] sm:$0xff] }
  0xc1   : > { %v1493_v18 = vpack.c.bf16 %v425_v7, %v423_v6  ;;  %v533_v61 = vld [vmem:[#allocation5 + $0x4f0] sm:$0xff]  ;;  %v536_v0 = vld [vmem:[#allocation5 + $0x508] sm:$0xff]  ;;  %v352_v6 = vld [vmem:[%s2297_s12 + $0x40] sm:$0xff]  ;;  %v1643_v7 = vpack.c.bf16 %v966_v63, %v964_v62 }
  0xc2   : > { %v544_v28 = vld [vmem:[#allocation5 + $0x548] sm:$0xff]  ;;  %v546_v29 = vld [vmem:[#allocation5 + $0x558] sm:$0xff]  ;;  %v366_v34 = vld [vmem:[%s2297_s12 + $0xb0] sm:$0xff] }
  0xc3   : > { %1566 = vmatpush1.bf16.msra.mxu0 %v1565_v14  ;;  %v428_v14 = vld [vmem:[#allocation5 + $0x1a8] sm:$0xff]  ;;  %1490 = vmatpush1.bf16.msra.mxu1 %v1489_v2  ;;  %v535_v2 = vld [vmem:[#allocation5 + $0x500] sm:$0xff]  ;;  %v978_v41 = vld [vmem:[#allocation7 + $0x98] sm:$0xff] }
  0xc4   : > { %1568 = vmatprep.subr.bf16.mxu0 %v1567_v19  ;;  %v1585_v19 = vpack.c.bf16 %v517_v9, %v515_v1  ;;  %1492 = vmatprep.subr.bf16.mxu1 %v1491_v12  ;;  %v1495_v25 = vpack.c.bf16 %v430_v15, %v428_v14  ;;  %v538_v1 = vld [vmem:[#allocation5 + $0x518] sm:$0xff]  ;;  %v965_v9 = vld [vmem:[#allocation7 + $0x30] sm:$0xff]  ;;  %v968_v12 = vld [vmem:[#allocation7 + $0x48] sm:$0xff] }
  0xc5   : > { %v1603_v10 = vpack.c.bf16 %v538_v1, %v536_v0  ;;  %v540_v14 = vld [vmem:[#allocation5 + $0x528] sm:$0xff]  ;;  %v542_v15 = vld [vmem:[#allocation5 + $0x538] sm:$0xff]  ;;  %v975_v49 = vld [vmem:[#allocation7 + $0x80] sm:$0xff] }
  0xc6   : > { %v976_v40 = vld [vmem:[#allocation7 + $0x88] sm:$0xff]  ;;  %v981_v62 = vld [vmem:[#allocation7 + $0xb0] sm:$0xff] }
  0xc7   : > { %1570 = vmatpush1.bf16.msra.mxu0 %v1569_v26  ;;  %v432_v26 = vld [vmem:[#allocation5 + $0x1c8] sm:$0xff]  ;;  %1494 = vmatpush1.bf16.msra.mxu1 %v1493_v18  ;;  %v553_v0 = vld [vmem:[#allocation5 + $0x590] sm:$0xff] }
  0xc8   : > { %1572 = vmatprep.subr.bf16.mxu0 %v1571_v30  ;;  %v1497_v30 = vpack.c.bf16 %v429_v22, %v427_v21  ;;  %v1499_v33 = vpack.c.bf16 %v434_v27, %v432_v26  ;;  %1496 = vmatprep.subr.bf16.mxu1 %v1495_v25  ;;  %v1647_v21 = vpack.c.bf16 %v970_v13, %v968_v12  ;;  %v967_v22 = vld [vmem:[#allocation7 + $0x40] sm:$0xff]  ;;  %v541_v25 = vld [vmem:[#allocation5 + $0x530] sm:$0xff]  ;;  %v972_v26 = vld [vmem:[#allocation7 + $0x68] sm:$0xff] }
  0xc9   : > { %v974_v27 = vld [vmem:[#allocation7 + $0x78] sm:$0xff]  ;;  %v365_v44 = vld [vmem:[%s2297_s12 + $0xa8] sm:$0xff]  ;;  %v557_v12 = vld [vmem:[#allocation5 + $0x5b0] sm:$0xff] }
  0xca   : > { %749 = vmatmul.mubr.f32.vlgmr.msra.gmra.mrb[0].mxu0 %v346_v37  ;;  %v525_v37 = vld [vmem:[#allocation5 + $0x4b0] sm:$0xff]  ;;  %v1651_v35 = vpack.c.bf16 %v974_v27, %v972_v26  ;;  %v984_v1 = vld [vmem:[#allocation7 + $0xc8] sm:$0xff]  ;;  %v994_v26 = vld [vmem:[#allocation7 + $0x118] sm:$0xff] }
  0xcb   : > { %1574 = vmatpush1.bf16.msra.mxu0 %v1573_v39  ;;  %754 = vmatprep.mubr.f32.mxu0 %v354_v46  ;;  %v438_v39 = vld [vmem:[#allocation5 + $0x1f8] sm:$0xff]  ;;  %v435_v46 = vld [vmem:[#allocation5 + $0x1e0] sm:$0xff]  ;;  %v988_v13 = vld [vmem:[#allocation7 + $0xe8] sm:$0xff] }
  0xcc   : > { %1576 = vmatprep.subr.bf16.mxu0 %v1575_v43  ;;  %1498 = vmatpush1.bf16.msra.mxu1 %v1497_v30  ;;  %v1593_v43 = vpack.c.bf16 %v525_v37, %v523_v32  ;;  %v1503_v45 = vpack.c.bf16 %v438_v39, %v436_v38  ;;  %v543_v30 = vld [vmem:[#allocation5 + $0x540] sm:$0xff]  ;;  %v973_v37 = vld [vmem:[#allocation7 + $0x70] sm:$0xff]  ;;  %v1611_v38 = vpack.c.bf16 %v546_v29, %v544_v28  ;;  %v564_v27 = vld [vmem:[#allocation5 + $0x5e8] sm:$0xff] }
  0xcd   : > { %1500 = vmatprep.subr.bf16.mxu1 %v1499_v33  ;;  %v1609_v33 = vpack.c.bf16 %v541_v25, %v539_v16  ;;  %v545_v39 = vld [vmem:[#allocation5 + $0x550] sm:$0xff]  ;;  %v562_v16 = vld [vmem:[#allocation5 + $0x5d8] sm:$0xff]  ;;  %v992_v25 = vld [vmem:[#allocation7 + $0x108] sm:$0xff] }
  0xce   : > { %755 = vmatmul.mubr.f32.gmra.mrb[2].mxu0 %v353_v54  ;;  %v1505_v54 = vpack.c.bf16 %v437_v47, %v435_v46  ;;  %v1613_v46 = vpack.c.bf16 %v545_v39, %v543_v30  ;;  %v547_v47 = vld [vmem:[#allocation5 + $0x560] sm:$0xff]  ;;  %v566_v28 = vld [vmem:[#allocation5 + $0x5f8] sm:$0xff]  ;;  %v568_v39 = vld [vmem:[#allocation5 + $0x608] sm:$0xff] }
  0xcf   : > { %1578 = vmatpush1.bf16.msra.mxu0 %v1577_v53  ;;  %760 = vmatprep.mubr.f32.mxu0 %v361_v60  ;;  %v534_v53 = vld [vmem:[#allocation5 + $0x4f8] sm:$0xff] }
  0xd0   : > { %1580 = vmatprep.subr.bf16.mxu0 %v1579_v57  ;;  %1502 = vmatpush1.bf16.msra.mxu1 %v1501_v42  ;;  %v1639_v57 = vpack.c.bf16 %v962_v51, %v960_v50  ;;  %v1599_v60 = vpack.c.bf16 %v534_v53, %v532_v52  ;;  %v548_v42 = vld [vmem:[#allocation5 + $0x568] sm:$0xff]  ;;  %v977_v50 = vld [vmem:[#allocation7 + $0x90] sm:$0xff] }
  0xd1   : > { %1504 = vmatprep.subr.bf16.mxu1 %v1503_v45  ;;  %v549_v52 = vld [vmem:[#allocation5 + $0x570] sm:$0xff]  ;;  %v980_v53 = vld [vmem:[#allocation7 + $0xa8] sm:$0xff] }
  0xd2   : > { %761 = vmatmul.mubr.f32.gmra.mrb[4].mxu0 %v360_v5  ;;  %v1601_v5 = vpack.c.bf16 %v533_v61, %v531_v56  ;;  %v554_v56 = vld [vmem:[#allocation5 + $0x598] sm:$0xff]  ;;  %v979_v61 = vld [vmem:[#allocation7 + $0xa0] sm:$0xff] }
  0xd3   : > { %1582 = vmatpush1.bf16.msra.mxu0 %v1581_v4  ;;  %766 = vmatprep.mubr.f32.mxu0 %v368_v11  ;;  %v1641_v4 = vpack.c.bf16 %v961_v59, %v959_v58  ;;  %v537_v11 = vld [vmem:[#allocation5 + $0x510] sm:$0xff]  ;;  %v1617_v58 = vpack.c.bf16 %v549_v52, %v547_v47  ;;  %v551_v59 = vld [vmem:[#allocation5 + $0x580] sm:$0xff] }
  0xd4   : > { %1584 = vmatprep.subr.bf16.mxu0 %v1583_v8  ;;  %1506 = vmatpush1.bf16.msra.mxu1 %v1505_v54  ;;  %v963_v8 = vld [vmem:[#allocation7 + $0x20] sm:$0xff]  ;;  %v982_v54 = vld [vmem:[#allocation7 + $0xb8] sm:$0xff] }
  0xd5   : > { %1640 = vmatprep.subr.bf16.mxu1 %v1639_v57  ;;  %v1645_v18 = vpack.c.bf16 %v965_v9, %v963_v8  ;;  %v1657_v57 = vpack.c.bf16 %v977_v50, %v975_v49  ;;  %v983_v9 = vld [vmem:[#allocation7 + $0xc0] sm:$0xff]  ;;  %v1000_v49 = vld [vmem:[#allocation7 + $0x148] sm:$0xff]  ;;  %v1002_v50 = vld [vmem:[#allocation7 + $0x158] sm:$0xff] }
  0xd6   : > { %767 = vmatmul.mubr.f32.gmra.mrb[6].mxu0 %v367_v20  ;;  %v359_v20 = vld [vmem:[%s2297_s12 + $0x78] sm:$0xff]  ;;  %v567_v47 = vld [vmem:[#allocation5 + $0x600] sm:$0xff] }
  0xd7   : > { %1586 = vmatpush1.bf16.msra.mxu0 %v1585_v19  ;;  %837 = vmatprep.mubr.f32.mxu0 %v349_v24  ;;  %v1605_v19 = vpack.c.bf16 %v537_v11, %v535_v2  ;;  %v1607_v24 = vpack.c.bf16 %v542_v15, %v540_v14  ;;  %v986_v2 = vld [vmem:[#allocation7 + $0xd8] sm:$0xff]  ;;  %v560_v15 = vld [vmem:[#allocation5 + $0x5c8] sm:$0xff]  ;;  %v348_v52 = vld [vmem:[%s2297_s12 + $0x20] sm:$0xff] }
  0xd8   : > { %1588 = vmatprep.subr.bf16.mxu0 %v1587_v23  ;;  %660 = vmatmul.mubr.f32.vlgmr.msra.gmra.mrb[0].mxu1 %v344_v3  ;;  %v969_v23 = vld [vmem:[#allocation7 + $0x50] sm:$0xff]  ;;  %v556_v3 = vld [vmem:[#allocation5 + $0x5a8] sm:$0xff]  ;;  %v1663_v8 = vpack.c.bf16 %v986_v2, %v984_v1  ;;  %v990_v14 = vld [vmem:[#allocation7 + $0xf8] sm:$0xff] }
  0xd9   : > { %665 = vmatprep.mubr.f32.mxu1 %v352_v6  ;;  %1642 = vmatpush1.bf16.msra.mxu1 %v1641_v4  ;;  %v1649_v32 = vpack.c.bf16 %v969_v23, %v967_v22  ;;  %v558_v4 = vld [vmem:[#allocation5 + $0x5b8] sm:$0xff]  ;;  %v1621_v6 = vpack.c.bf16 %v553_v0, %v551_v59  ;;  %v989_v22 = vld [vmem:[#allocation7 + $0xf0] sm:$0xff]  ;;  %v1627_v23 = vpack.c.bf16 %v562_v16, %v560_v15  ;;  %v1008_v2 = vld [vmem:[#allocation7 + $0x188] sm:$0xff] }
  0xda   : > { %1644 = vmatprep.subr.bf16.mxu1 %v1643_v7  ;;  %v555_v7 = vld [vmem:[#allocation5 + $0x5a0] sm:$0xff]  ;;  %v1623_v11 = vpack.c.bf16 %v558_v4, %v556_v3  ;;  %v1006_v59 = vld [vmem:[#allocation7 + $0x178] sm:$0xff]  ;;  %v1005_v0 = vld [vmem:[#allocation7 + $0x170] sm:$0xff] }
  0xdb   : > { %1590 = vmatpush1.bf16.msra.mxu0 %v1589_v31  ;;  %v358_v31 = vld [vmem:[%s2297_s12 + $0x70] sm:$0xff]  ;;  %v363_v1 = vld [vmem:[%s2297_s12 + $0x98] sm:$0xff]  ;;  %v1011_v15 = vld [vmem:[#allocation7 + $0x1a0] sm:$0xff] }
  0xdc   : > { %1592 = vmatprep.subr.bf16.mxu0 %v1591_v36  ;;  %666 = vmatmul.mubr.f32.gmra.mrb[2].mxu1 %v351_v17  ;;  %v971_v36 = vld [vmem:[#allocation7 + $0x60] sm:$0xff]  ;;  %v1010_v3 = vld [vmem:[#allocation7 + $0x198] sm:$0xff]  ;;  %v1013_v16 = vld [vmem:[#allocation7 + $0x1b0] sm:$0xff] }
  0xdd   : > { %671 = vmatprep.mubr.f32.mxu1 %v359_v20  ;;  %1646 = vmatpush1.bf16.msra.mxu1 %v1645_v18  ;;  %v1653_v45 = vpack.c.bf16 %v973_v37, %v971_v36  ;;  %v1625_v18 = vpack.c.bf16 %v557_v12, %v555_v7  ;;  %v1667_v20 = vpack.c.bf16 %v990_v14, %v988_v13  ;;  %v565_v36 = vld [vmem:[#allocation5 + $0x5f0] sm:$0xff]  ;;  %v996_v37 = vld [vmem:[#allocation7 + $0x128] sm:$0xff]  ;;  %v1007_v7 = vld [vmem:[#allocation7 + $0x180] sm:$0xff] }
  0xde   : > { %1648 = vmatprep.subr.bf16.mxu1 %v1647_v21  ;;  %v987_v21 = vld [vmem:[#allocation7 + $0xe0] sm:$0xff]  ;;  %v369_v13 = vld [vmem:[%s2297_s12 + $0xc8] sm:$0xff] }
  0xdf   : > { %1594 = vmatpush1.bf16.msra.mxu0 %v1593_v43  ;;  %v550_v43 = vld [vmem:[#allocation5 + $0x578] sm:$0xff]  ;;  %v1669_v29 = vpack.c.bf16 %v989_v22, %v987_v21  ;;  %v364_v21 = vld [vmem:[%s2297_s12 + $0xa0] sm:$0xff] }
  0xe0   : > { %1596 = vmatprep.subr.bf16.mxu0 %v1595_v48  ;;  %672 = vmatmul.mubr.f32.gmra.mrb[4].mxu1 %v358_v31  ;;  %v1655_v48 = vpack.c.bf16 %v978_v41, %v976_v40  ;;  %v1615_v51 = vpack.c.bf16 %v550_v43, %v548_v42  ;;  %v563_v31 = vld [vmem:[#allocation5 + $0x5e0] sm:$0xff]  ;;  %v570_v40 = vld [vmem:[#allocation5 + $0x618] sm:$0xff] }
  0xe1   : > { %677 = vmatprep.mubr.f32.mxu1 %v366_v34  ;;  %1650 = vmatpush1.bf16.msra.mxu1 %v1649_v32  ;;  %v1671_v32 = vpack.c.bf16 %v994_v26, %v992_v25  ;;  %v993_v34 = vld [vmem:[#allocation7 + $0x110] sm:$0xff]  ;;  %v1633_v42 = vpack.c.bf16 %v565_v36, %v563_v31  ;;  %v371_v22 = vld [vmem:[%s2297_s12 + $0xd8] sm:$0xff]  ;;  %v1015_v26 = vld [vmem:[#allocation7 + $0x1c0] sm:$0xff] }
  0xe2   : > { %1652 = vmatprep.subr.bf16.mxu1 %v1651_v35  ;;  %v1631_v35 = vpack.c.bf16 %v566_v28, %v564_v27  ;;  %v1017_v27 = vld [vmem:[#allocation7 + $0x1d0] sm:$0xff]  ;;  %v1148_v36 = vld [vmem:[#allocation8 + $0x88] sm:$0xff] }
  0xe3   : > { %1598 = vmatpush1.bf16.msra.mxu0 %v1597_v55  ;;  %v552_v55 = vld [vmem:[#allocation5 + $0x588] sm:$0xff]  ;;  %v1697_v28 = vpack.c.bf16 %v1017_v27, %v1015_v26  ;;  %v1153_v27 = vld [vmem:[#allocation8 + $0xb0] sm:$0xff] }
  0xe4   : > { %1600 = vmatprep.subr.bf16.mxu0 %v1599_v60  ;;  %678 = vmatmul.mubr.f32.gmra.mrb[6].mxu1 %v365_v44  ;;  %v1659_v60 = vpack.c.bf16 %v982_v54, %v980_v53  ;;  %v1619_v63 = vpack.c.bf16 %v554_v56, %v552_v55  ;;  %v995_v44 = vld [vmem:[#allocation7 + $0x120] sm:$0xff]  ;;  %v1001_v55 = vld [vmem:[#allocation7 + $0x150] sm:$0xff] }
  0xe5   : > { %1654 = vmatpush1.bf16.msra.mxu1 %v1653_v45  ;;  %v997_v45 = vld [vmem:[#allocation7 + $0x130] sm:$0xff]  ;;  %v999_v54 = vld [vmem:[#allocation7 + $0x140] sm:$0xff] }
  0xe6   : > { %1656 = vmatprep.subr.bf16.mxu1 %v1655_v48  ;;  %v569_v48 = vld [vmem:[#allocation5 + $0x610] sm:$0xff]  ;;  %v356_v56 = vld [vmem:[%s2297_s12 + $0x60] sm:$0xff] }
  0xe7   : > { %1602 = vmatpush1.bf16.msra.mxu0 %v1601_v5  ;;  %v1661_v5 = vpack.c.bf16 %v981_v62, %v979_v61  ;;  %v1637_v53 = vpack.c.bf16 %v569_v48, %v567_v47  ;;  %v355_v61 = vld [vmem:[%s2297_s12 + $0x58] sm:$0xff] }
  0xe8   : > { %1604 = vmatprep.subr.bf16.mxu0 %v1603_v10  ;;  %v985_v10 = vld [vmem:[#allocation7 + $0xd0] sm:$0xff] }
  0xe9   : > { %1658 = vmatpush1.bf16.msra.mxu1 %v1657_v57  ;;  %v1665_v17 = vpack.c.bf16 %v985_v10, %v983_v9  ;;  %v1679_v57 = vpack.c.bf16 %v1002_v50, %v1000_v49  ;;  %v370_v9 = vld [vmem:[%s2297_s12 + $0xd0] sm:$0xff]  ;;  %v1012_v10 = vld [vmem:[#allocation7 + $0x1a8] sm:$0xff]  ;;  %v372_v49 = vld [vmem:[%s2413_s2] sm:$0x3] }
  0xea   : > { %1660 = vmatprep.subr.bf16.mxu1 %v1659_v60  ;;  %v1681_v60 = vpack.c.bf16 %v1001_v55, %v999_v54 }
  0xeb   : > { %1606 = vmatpush1.bf16.msra.mxu0 %v1605_v19  ;;  %v559_v19 = vld [vmem:[#allocation5 + $0x5c0] sm:$0xff] }
  0xec   : > { %1608 = vmatprep.subr.bf16.mxu0 %v1607_v24  ;;  %v561_v24 = vld [vmem:[#allocation5 + $0x5d0] sm:$0xff] }
  0xed   : > { %1662 = vmatpush1.bf16.msra.mxu1 %v1661_v5  ;;  %v1629_v30 = vpack.c.bf16 %v561_v24, %v559_v19  ;;  %v362_v5 = vld [vmem:[%s2297_s12 + $0x90] sm:$0xff]  ;;  %v1018_v24 = vld [vmem:[#allocation7 + $0x1d8] sm:$0xff] }
  0xee   : > { %1664 = vmatprep.subr.bf16.mxu1 %v1663_v8  ;;  %v1009_v8 = vld [vmem:[#allocation7 + $0x190] sm:$0xff] }
  0xef   : > { %1610 = vmatpush1.bf16.msra.mxu0 %v1609_v33  ;;  %v991_v33 = vld [vmem:[#allocation7 + $0x100] sm:$0xff]  ;;  %v1689_v12 = vpack.c.bf16 %v1009_v8, %v1007_v7  ;;  %v350_v19 = vld [vmem:[%s2297_s12 + $0x30] sm:$0xff] }
  0xf0   : > { %1612 = vmatprep.subr.bf16.mxu0 %v1611_v38  ;;  %v998_v38 = vld [vmem:[#allocation7 + $0x138] sm:$0xff]  ;;  %v1673_v41 = vpack.c.bf16 %v993_v34, %v991_v33  ;;  %v1021_v33 = vld [vmem:[#allocation7 + $0x1f0] sm:$0xff] }
  0xf1   : > { %1666 = vmatpush1.bf16.msra.mxu1 %v1665_v17  ;;  %v1675_v43 = vpack.c.bf16 %v998_v38, %v996_v37  ;;  %v1693_v17 = vpack.c.bf16 %v1013_v16, %v1011_v15 }
  0xf2   : > { %1668 = vmatprep.subr.bf16.mxu1 %v1667_v20  ;;  %v357_v20 = vld [vmem:[%s2297_s12 + $0x68] sm:$0xff]  ;;  %s1259_s12 = scalar_lea.sflag [#allocation4], %s2293_s21 }
  0xf3   : > { %1614 = vmatpush1.bf16.msra.mxu0 %v1613_v46  ;;  %v1635_v46 = vpack.c.bf16 %v570_v40, %v568_v39 }
  0xf4   : > { %1616 = vmatprep.subr.bf16.mxu0 %v1615_v51  ;;  %v1677_v51 = vpack.c.bf16 %v997_v45, %v995_v44 }
  0xf5   : > { %1670 = vmatpush1.bf16.msra.mxu1 %v1669_v29  ;;  %v1020_v29 = vld [vmem:[#allocation7 + $0x1e8] sm:$0xff] }
  0xf6   : > { %1672 = vmatprep.subr.bf16.mxu1 %v1671_v32  ;;  %v1019_v32 = vld [vmem:[#allocation7 + $0x1e0] sm:$0xff] }
  0xf7   : > { %1618 = vmatpush1.bf16.msra.mxu0 %v1617_v58  ;;  %v1004_v58 = vld [vmem:[#allocation7 + $0x168] sm:$0xff]  ;;  %v1701_v34 = vpack.c.bf16 %v1021_v33, %v1019_v32 }
  0xf8   : > { %1620 = vmatprep.subr.bf16.mxu0 %v1619_v63  ;;  %v1683_v62 = vpack.c.bf16 %v1006_v59, %v1004_v58  ;;  %v1003_v63 = vld [vmem:[#allocation7 + $0x160] sm:$0xff] }
  0xf9   : > { %1674 = vmatpush1.bf16.msra.mxu1 %v1673_v41  ;;  %v1685_v4 = vpack.c.bf16 %v1005_v0, %v1003_v63  ;;  %v1131_v59 = vld [vmem:[#allocation8] sm:$0xff]  ;;  %v1149_v63 = vld [vmem:[#allocation8 + $0x90] sm:$0xff]  ;;  %v1150_v0 = vld [vmem:[#allocation8 + $0x98] sm:$0xff] }
  0xfa   : > { %1676 = vmatprep.subr.bf16.mxu1 %v1675_v43  ;;  %v1707_v8 = vpack.c.bf16 %v1150_v0, %v1149_v63  ;;  %v1161_v63 = vld [vmem:[#allocation8 + $0xf0] sm:$0xff]  ;;  %v1162_v0 = vld [vmem:[#allocation8 + $0xf8] sm:$0xff] }
  0xfb   : > { %1622 = vmatpush1.bf16.msra.mxu0 %v1621_v6  ;;  %v1687_v6 = vpack.c.bf16 %v1010_v3, %v1008_v2 }
  0xfc   : > { %1624 = vmatprep.subr.bf16.mxu0 %v1623_v11  ;;  %v1014_v11 = vld [vmem:[#allocation7 + $0x1b8] sm:$0xff] }
  0xfd   : > { %1678 = vmatpush1.bf16.msra.mxu1 %v1677_v51  ;;  %v1691_v14 = vpack.c.bf16 %v1014_v11, %v1012_v10  ;;  %v1134_v10 = vld [vmem:[#allocation8 + $0x18] sm:$0xff] }
  0xfe   : > { %1680 = vmatprep.subr.bf16.mxu1 %v1679_v57 }
  0xff   : > { %1626 = vmatpush1.bf16.msra.mxu0 %v1625_v18  ;;  %v2056_v18 = vmov 0.0  }
 0x100   : > { %1628 = vmatprep.subr.bf16.mxu0 %v1627_v23  ;;  %v1016_v23 = vld [vmem:[#allocation7 + $0x1c8] sm:$0xff] }
 0x101   : > { %1682 = vmatpush1.bf16.msra.mxu1 %v1681_v60  ;;  %v1695_v25 = vpack.c.bf16 %v1018_v24, %v1016_v23  ;;  %v1132_v60 = vld [vmem:[#allocation8 + $0x8] sm:$0xff]  ;;  %v1135_v23 = vld [vmem:[#allocation8 + $0x20] sm:$0xff] }
 0x102   : > { %1684 = vmatprep.subr.bf16.mxu1 %v1683_v62  ;;  %v1705_v3 = vpack.c.bf16 %v1132_v60, %v1131_v59  ;;  %v1136_v24 = vld [vmem:[#allocation8 + $0x28] sm:$0xff]  ;;  %v1143_v60 = vld [vmem:[#allocation8 + $0x60] sm:$0xff] }
 0x103   : > { %1630 = vmatpush1.bf16.msra.mxu0 %v1629_v30  ;;  %v1022_v30 = vld [vmem:[#allocation7 + $0x1f8] sm:$0xff] }
 0x104   : > { %1632 = vmatprep.subr.bf16.mxu0 %v1631_v35  ;;  %v1699_v31 = vpack.c.bf16 %v1022_v30, %v1020_v29  ;;  %v1147_v35 = vld [vmem:[#allocation8 + $0x80] sm:$0xff] }
 0x105   : > { %1686 = vmatpush1.bf16.msra.mxu1 %v1685_v4  ;;  %v1703_v37 = vpack.c.bf16 %v1148_v36, %v1147_v35  ;;  %v1137_v36 = vld [vmem:[#allocation8 + $0x30] sm:$0xff] }
 0x106   : > { %1688 = vmatprep.subr.bf16.mxu1 %v1687_v6 }
 0x107   : > { %1634 = vmatpush1.bf16.msra.mxu0 %v1633_v42 }
 0x108   : > { %1636 = vmatprep.subr.bf16.mxu0 %v1635_v46  ;;  %v572_v46 = vlaneseq }
 0x109   : > { %1690 = vmatpush1.bf16.msra.mxu1 %v1689_v12 }
 0x10a   : > { %838 = vmatmul.mubr.f32.vlgmr.msra.gmra.mrb[0].mxu0 %v348_v52  ;;  %1692 = vmatprep.subr.bf16.mxu1 %v1691_v14  ;;  %v2339_v47 = vshrl.u32 %v572_v46, 7  ;;  %v1152_v14 = vld [vmem:[#allocation8 + $0xa8] sm:$0xff] }
 0x10b   : > { %1638 = vmatpush1.bf16.msra.mxu0 %v1637_v53  ;;  %843 = vmatprep.mubr.f32.mxu0 %v356_v56  ;;  %v1140_v46 = vld [vmem:[#allocation8 + $0x48] sm:$0xff] }
 0x10c   : > { %v574_v48 = vsub.s32 0, %v2339_v47  ;;  %v578_v50 = vsub.s32 1, %v2339_v47 }
 0x10d   : > { %1694 = vmatpush1.bf16.msra.mxu1 %v1693_v17 }
 0x10e   : > { %844 = vmatmul.mubr.f32.gmra.mrb[2].mxu0 %v355_v61  ;;  %1696 = vmatprep.subr.bf16.mxu1 %v1695_v25  ;;  %v575_v51 = vrot.slane %v372_v49, %v574_v48  ;;  %v579_v52 = vrot.slane %v372_v49, %v578_v50  ;;  %v1157_v49 = vld [vmem:[#allocation8 + $0xd0] sm:$0xff] }
 0x10f   : > { %849 = vmatprep.mubr.f32.mxu0 %v363_v1 }
 0x111   : > { %1698 = vmatpush1.bf16.msra.mxu1 %v1697_v28  ;;  %v1154_v28 = vld [vmem:[#allocation8 + $0xb8] sm:$0xff] }
 0x112   : > { %850 = vmatmul.mubr.f32.gmra.mrb[4].mxu0 %v362_v5  ;;  %1700 = vmatprep.subr.bf16.mxu1 %v1699_v31  ;;  %v1713_v31 = vpack.c.bf16 %v1136_v24, %v1135_v23  ;;  %v1715_v35 = vpack.c.bf16 %v1154_v28, %v1153_v27 }
 0x113   : > { %855 = vmatprep.mubr.f32.mxu0 %v370_v9  ;;  %v1133_v9 = vld [vmem:[#allocation8 + $0x10] sm:$0xff] }
 0x114   : > { %v1709_v17 = vpack.c.bf16 %v1134_v10, %v1133_v9 }
 0x115   : > { %1702 = vmatpush1.bf16.msra.mxu1 %v1701_v34 }
 0x116   : > { %856 = vmatmul.mubr.f32.gmra.mrb[6].mxu0 %v369_v13  ;;  %1704 = vmatprep.subr.bf16.mxu1 %v1703_v37  ;;  %v1151_v13 = vld [vmem:[#allocation8 + $0xa0] sm:$0xff]  ;;  %v1138_v37 = vld [vmem:[#allocation8 + $0x38] sm:$0xff] }
 0x117   : > { %926 = vmatprep.mubr.f32.mxu0 %v2056_v18 }
 0x11a   : > { %1388 = vmatmul.mubr.msk.f32.vlgmr.msra.gmra.mrb[0].mxu0 %vm582_vm0, %v350_v19 }
 0x11b   : > { %932 = vmatprep.mubr.f32.mxu0 %v2056_v18 }
 0x11e   : > { %1389 = vmatmul.mubr.msk.f32.gmra.mrb[2].mxu0 %vm582_vm0, %v357_v20 }
 0x11f   : > { %938 = vmatprep.mubr.f32.mxu0 %v2056_v18 }
 0x122   : > { %1390 = vmatmul.mubr.msk.f32.gmra.mrb[4].mxu0 %vm582_vm0, %v364_v21 }
 0x123   : > { %944 = vmatprep.mubr.f32.mxu0 %v2056_v18 }
 0x126   : > { %1391 = vmatmul.mubr.msk.f32.gmra.mrb[6].mxu0 %vm582_vm0, %v371_v22  ;;  %v1711_v22 = vpack.c.bf16 %v1152_v14, %v1151_v13 }
 0x1ab   : > { %v661_v38 = vpop.f32.mrb[0].mxu1 }
 0x1ac   : > { %v663_v39 = vpop.f32.mrb[1].mxu1  ;;  %v662_v53 = vadd.f32 %v661_v38, %v575_v51 }
 0x1ad   : > { %v664_v54 = vadd.f32 %v663_v39, %v579_v52  ;;  %v1155_v39 = vld [vmem:[#allocation8 + $0xc0] sm:$0xff] }
 0x1af   : > { %v667_v40 = vpop.f32.mrb[2].mxu1 }
 0x1b0   : > { %v669_v41 = vpop.f32.mrb[3].mxu1  ;;  %v668_v58 = vadd.f32 %v667_v40, %v575_v51  ;;  %v1156_v40 = vld [vmem:[#allocation8 + $0xc8] sm:$0xff] }
 0x1b1   : > { %v670_v62 = vadd.f32 %v669_v41, %v579_v52 }
 0x1b3   : > { %v673_v42 = vpop.f32.mrb[4].mxu1 }
 0x1b4   : > { %v675_v43 = vpop.f32.mrb[5].mxu1  ;;  %v674_v7 = vadd.f32 %v673_v42, %v575_v51  ;;  %v1717_v42 = vpack.c.bf16 %v1138_v37, %v1137_v36 }
 0x1b5   : > { %v676_v12 = vadd.f32 %v675_v43, %v579_v52 }
 0x1b7   : > { %v679_v44 = vpop.f32.mrb[6].mxu1 }
 0x1b8   : > { %v681_v45 = vpop.f32.mrb[7].mxu1  ;;  %v680_v21 = vadd.f32 %v679_v44, %v575_v51  ;;  %v1719_v44 = vpack.c.bf16 %v1156_v40, %v1155_v39  ;;  %v1158_v51 = vld [vmem:[#allocation8 + $0xd8] sm:$0xff] }
 0x1b9   : > { %v682_v26 = vadd.f32 %v681_v45, %v579_v52  ;;  %v1139_v45 = vld [vmem:[#allocation8 + $0x40] sm:$0xff] }
 0x1ba   : > { %v1721_v52 = vpack.c.bf16 %v1140_v46, %v1139_v45 }
 0x1ed   : > { %v928_v55 = vpop.f32.mrb[0].mxu0 }
 0x1ee   : > { %v1736_v56 = vadd.f32 %v928_v55, %v662_v53  ;;  %v930_v57 = vpop.f32.mrb[1].mxu0  ;;  %v1723_v53 = vpack.c.bf16 %v1158_v51, %v1157_v49  ;;  %v1142_v55 = vld [vmem:[#allocation8 + $0x58] sm:$0xff] }
 0x1ef   : > { %v1738_v61 = vadd.f32 %v930_v57, %v664_v54  ;;  %v1141_v54 = vld [vmem:[#allocation8 + $0x50] sm:$0xff]  ;;  %v1160_v57 = vld [vmem:[#allocation8 + $0xe8] sm:$0xff] }
 0x1f0   : > { %v951_v4 = vmax.f32 %v1736_v56, 0.0  ;;  %v1159_v56 = vld [vmem:[#allocation8 + $0xe0] sm:$0xff] }
 0x1f1   : > { %v952_v1 = vmax.f32 %v1738_v61, 0.0  ;;  %v934_v2 = vpop.f32.mrb[2].mxu0  ;;  %v1727_v59 = vpack.c.bf16 %v1160_v57, %v1159_v56  ;;  %v1144_v61 = vld [vmem:[#allocation8 + $0x68] sm:$0xff] }
 0x1f2   : > { %v1740_v5 = vadd.f32 %v934_v2, %v668_v58  ;;  %v936_v6 = vpop.f32.mrb[3].mxu0  ;;  %v1725_v58 = vpack.c.bf16 %v1142_v55, %v1141_v54  ;;  %v1145_v2 = vld [vmem:[#allocation8 + $0x70] sm:$0xff] }
 0x1f3   : > { %v1742_v11 = vadd.f32 %v936_v6, %v670_v62  ;;  %1098 = vmatprep.mubr.f32.mxu1 %v952_v1  ;;  %v1729_v62 = vpack.c.bf16 %v1144_v61, %v1143_v60  ;;  %v1731_v1 = vpack.c.bf16 %v1162_v0, %v1161_v63 }
 0x1f4   : > { %1099 = vmatmul.mubr.f32.vlgmr.msra.gmra.mrb[8].mxu1 %v951_v4  ;;  %v953_v18 = vmax.f32 %v1740_v5, 0.0  ;;  %v373_v5 = vld [vmem:[%s2415_s4] sm:$0x3] }
 0x1f5   : > { %v954_v15 = vmax.f32 %v1742_v11, 0.0  ;;  %v940_v16 = vpop.f32.mrb[4].mxu0  ;;  %1706 = vmatpush3.bf16.msra.mxu1 %v1705_v3  ;;  %v1146_v3 = vld [vmem:[#allocation8 + $0x78] sm:$0xff]  ;;  %v1027_v6 = vrot.slane %v373_v5, %v574_v48 }
 0x1f6   : > { %v1744_v19 = vadd.f32 %v940_v16, %v674_v7  ;;  %v942_v20 = vpop.f32.mrb[5].mxu0  ;;  %1708 = vmatprep.subr.bf16.mxu1 %v1707_v8  ;;  %v1733_v4 = vpack.c.bf16 %v1146_v3, %v1145_v2  ;;  %v1031_v7 = vrot.slane %v373_v5, %v578_v50 }
 0x1f7   : > { %v1746_v25 = vadd.f32 %v942_v20, %v676_v12  ;;  %1104 = vmatprep.mubr.f32.mxu1 %v954_v15 }
 0x1f8   : > { %1105 = vmatmul.mubr.f32.gmra.mrb[10].mxu1 %v953_v18  ;;  %v955_v32 = vmax.f32 %v1744_v19, 0.0 }
 0x1f9   : > { %v956_v29 = vmax.f32 %v1746_v25, 0.0  ;;  %v946_v30 = vpop.f32.mrb[6].mxu0  ;;  %1710 = vmatpush3.bf16.msra.mxu1 %v1709_v17 }
 0x1fa   : > { %v1748_v33 = vadd.f32 %v946_v30, %v680_v21  ;;  %v948_v34 = vpop.f32.mrb[7].mxu0  ;;  %1712 = vmatprep.subr.bf16.mxu1 %v1711_v22  ;;  %v1392_v30 = vld [vmem:[%s2417_s6] ss:$0 sm:$0xff] }
 0x1fb   : > { %v1750_v38 = vadd.f32 %v948_v34, %v682_v26  ;;  %1110 = vmatprep.mubr.f32.mxu1 %v956_v29 }
 0x1fc   : > { %1111 = vmatmul.mubr.f32.gmra.mrb[12].mxu1 %v955_v32  ;;  %v957_v43 = vmax.f32 %v1748_v33, 0.0 }
 0x1fd   : > { %v958_v41 = vmax.f32 %v1750_v38, 0.0  ;;  %1714 = vmatpush3.bf16.msra.mxu1 %v1713_v31 }
 0x1fe   : > { %1716 = vmatprep.subr.bf16.mxu1 %v1715_v35 }
 0x1ff   : > { %1116 = vmatprep.mubr.f32.mxu1 %v958_v41 }
 0x200   : > { %1117 = vmatmul.mubr.f32.gmra.mrb[14].mxu1 %v957_v43 }
 0x201   : > { %1718 = vmatpush3.bf16.msra.mxu1 %v1717_v42 }
 0x202   : > { %1720 = vmatprep.subr.bf16.mxu1 %v1719_v44 }
 0x205   : > { %1722 = vmatpush3.bf16.msra.mxu1 %v1721_v52 }
 0x206   : > { %1724 = vmatprep.subr.bf16.mxu1 %v1723_v53 }
 0x209   : > { %1726 = vmatpush3.bf16.msra.mxu1 %v1725_v58 }
 0x20a   : > { %1728 = vmatprep.subr.bf16.mxu1 %v1727_v59 }
 0x20d   : > { %1730 = vmatpush3.bf16.msra.mxu1 %v1729_v62 }
 0x20e   : > { %1732 = vmatprep.subr.bf16.mxu1 %v1731_v1 }
 0x211   : > { %1734 = vmatpush3.bf16.msra.mxu1 %v1733_v4 }
 0x2c7   : > { %v1100_v8 = vpop.f32.mrb[8].mxu1 }
 0x2c8   : > { %v1101_v9 = vadd.f32 %v1100_v8, %v1027_v6  ;;  %v1102_v10 = vpop.f32.mrb[9].mxu1 }
 0x2c9   : > { %v1103_v11 = vadd.f32 %v1102_v10, %v1031_v7 }
 0x2ca   : > { %v1123_v14 = vmax.f32 %v1101_v9, 0.0 }
 0x2cb   : > { %v1124_v12 = vmax.f32 %v1103_v11, 0.0  ;;  %v1106_v13 = vpop.f32.mrb[10].mxu1 }
 0x2cc   : > { %v1107_v15 = vadd.f32 %v1106_v13, %v1027_v6  ;;  %v1108_v16 = vpop.f32.mrb[11].mxu1 }
 0x2cd   : > { %v1109_v17 = vadd.f32 %v1108_v16, %v1031_v7  ;;  %1233 = vmatprep.mubr.f32.mxu1 %v1124_v12 }
 0x2ce   : > { %1234 = vmatmul.mubr.f32.vlgmr.msra.gmra.mrb[16].mxu1 %v1123_v14  ;;  %v1125_v20 = vmax.f32 %v1107_v15, 0.0 }
 0x2cf   : > { %v1126_v18 = vmax.f32 %v1109_v17, 0.0  ;;  %v1112_v19 = vpop.f32.mrb[12].mxu1 }
 0x2d0   : > { %v1113_v21 = vadd.f32 %v1112_v19, %v1027_v6  ;;  %v1114_v48 = vpop.f32.mrb[13].mxu1 }
 0x2d1   : > { %v1115_v22 = vadd.f32 %v1114_v48, %v1031_v7  ;;  %1238 = vmatprep.mubr.f32.mxu1 %v1126_v18 }
 0x2d2   : > { %1239 = vmatmul.mubr.f32.gmra.mrb[18].mxu1 %v1125_v20  ;;  %v1127_v23 = vmax.f32 %v1113_v21, 0.0 }
 0x2d3   : > { %v1128_v47 = vmax.f32 %v1115_v22, 0.0  ;;  %v1118_v50 = vpop.f32.mrb[14].mxu1 }
 0x2d4   : > { %v1119_v24 = vadd.f32 %v1118_v50, %v1027_v6  ;;  %v1120_v25 = vpop.f32.mrb[15].mxu1 }
 0x2d5   : > { %v1121_v26 = vadd.f32 %v1120_v25, %v1031_v7  ;;  %1243 = vmatprep.mubr.f32.mxu1 %v1128_v47 }
 0x2d6   : > { %1244 = vmatmul.mubr.f32.gmra.mrb[20].mxu1 %v1127_v23  ;;  %v1129_v28 = vmax.f32 %v1119_v24, 0.0 }
 0x2d7   : > { %v1130_v27 = vmax.f32 %v1121_v26, 0.0 }
 0x2d9   : > { %1248 = vmatprep.mubr.f32.mxu1 %v1130_v27 }
 0x2da   : > { %1249 = vmatmul.mubr.f32.gmra.mrb[22].mxu1 %v1129_v28 }
 0x3a1   : > { %v1431_v29 = vpop.f32.mrb[16].mxu1 }
 0x3a2   : > { %v1432_v31 = vpop.f32.mrb[17].mxu1 }
 0x3a3   : > { %v1433_v32 = vadd.f32 %v1432_v31, %v1431_v29 }
 0x3a5   : > { %v1236_v33 = vadd.f32 %v1433_v32, %v1392_v30  ;;  %v1434_v34 = vpop.f32.mrb[18].mxu1 }
 0x3a6   : > { %v1435_v35 = vpop.f32.mrb[19].mxu1 }
 0x3a7   : > { %1254 = vst [vmem:[%s341_s14] sm:$0xff] %v1236_v33  ;;  %v1436_v36 = vadd.f32 %v1435_v35, %v1434_v34 }
 0x3a9   : > { %v1241_v37 = vadd.f32 %v1436_v36, %v1392_v30  ;;  %v1437_v38 = vpop.f32.mrb[20].mxu1 }
 0x3aa   : > { %v1438_v39 = vpop.f32.mrb[21].mxu1 }
 0x3ab   : > { %1255 = vst [vmem:[%s341_s14 + $0x8] sm:$0xff] %v1241_v37  ;;  %v1439_v40 = vadd.f32 %v1438_v39, %v1437_v38 }
 0x3ad   : > { %v1246_v41 = vadd.f32 %v1439_v40, %v1392_v30  ;;  %v1440_v42 = vpop.f32.mrb[22].mxu1 }
 0x3ae   : > { %v1441_v43 = vpop.f32.mrb[23].mxu1 }
 0x3af   : > { %1256 = vst [vmem:[%s341_s14 + $0x10] sm:$0xff] %v1246_v41  ;;  %v1442_v44 = vadd.f32 %v1441_v43, %v1440_v42 }
 0x3b1   : > { %v1251_v45 = vadd.f32 %v1442_v44, %v1392_v30 }
 0x3b3   : > { %1257 = vst [vmem:[%s341_s14 + $0x18] sm:$0xff] %v1251_v45 }
 0x3b4   : > { %1983 = shalt.err (!%p1980_p4)
}
 0x3b5   : > { %s1984_s11 = scalar_lea.hbm %s2367_s29, 512  ;;  %s1988_s16 = scalar_lea.hbm %s2418_s7, 1024 }
 0x3b6   : > { %p1985_p9 = scmp.ne.s32.totalorder %s2367_s29, %s1984_s11  ;;  %p1989_p8 = scmp.lt.u32.totalorder %s2367_s29, %s2418_s7 }
 0x3b7   : > { %p1990_p13 = scmp.lt.u32.totalorder %s1988_s16, %s1984_s11  ;;  %p1992_p10 = scmp.lt.u32.totalorder %s1984_s11, %s2367_s29 }
 0x3b8   : > { %p1986_p0 = pnand %p1985_p9, %p2245_p5 }
 0x3b9   : > { %p1991_p6 = por %p1990_p13, %p1989_p8 }
 0x3ba   : > { %p1987_p11 = pneg %p1986_p0 }
 0x3bb   : > { %p1993_p3 = por %p1992_p10, %p1991_p6 }
 0x3bd   : > { %p1994_p7 = pnand %p1993_p3, %p1987_p11 }
 0x3bf   : > { %1997 = shalt.err (!%p1994_p7)
}
 0x3c0   : > { %s2058_s18 = smov 128   ;;  %s2059_s23 = smov 8  }
 0x3c1   : > { %1784 = dma.vmem_to_hbm [thread:$0]  (%p2245_p5), %s2362_s17, 512, %s2367_s29, %s1259_s12, %s2058_s18, %s2058_s18, %s2059_s23  }
 0x3c2 PF: > { %s2438_s30 = sld [smem:[#allocation15_spill]]  ;;  %s1287_s28 = sand.u32 1, %s2032_s24  }
 0x3c3   : > { %p2440_p2 = scmp.ge.s32.totalorder %s2044_s27, 2  ;;  %s1288_s9 = scalar_lea.sflag [#allocation4], %s1287_s28 }
 0x3c8   : > { %p2439_p12 = scmp.ne.s32.totalorder %s2438_s30, 0 }
 0x3ca   : > { %p1801_p1 = pnand %p2440_p2, %p2439_p12 }
 0x3cc   : > { %2027 = dma.done.wait (!%p1801_p1), %s1288_s9, 512  }
 0x3cd   : > { %2029 = vsyncadd (!%p1801_p1), %s1288_s9, 4294966784  ;;  %p22_p4 = scmp.ge.s32.totalorder %s2231_s8, 4   ;;  %s2441_s24 = smov %s2036_s25 }
 0x3ce   : > { %s2442_s25 = smov %s2040_s26  ;;  %s2443_s26 = smov %s2241_s19 }
 0x3cf   : > { %s2444_s27 = smov %s2231_s8  ;;  %24 = sbr.rel (!%p22_p4) target bundleno = 7 (0x7), region = 105 }
 0x3d6   :  { %1293 = vsyncpa [#allocation3], 1 }
 0x3d7   :  { %1295 = vsyncpa [#allocation3 + $0x1], 1 }
 0x3d8   :  { %1296 = vsyncpa [#allocation6], 1 }
 0x3d9   :  { %1297 = vsyncpa [#allocation9], 1 }
 0x3da   :  { %1298 = vsyncpa [#allocation4], 1 }
 0x3db   :  { %1300 = vsyncpa [#allocation4 + $0x1], 1 }

</bundles_post_ra>
